<compile_context>
chip_gen: v7x
topology: tpu7x:2x2x1
jax: 0.10.0
libtpu: 0.0.40
codegen_flags: <defaults>
</compile_context>

<pallas_src>
import functools

import numpy as np
import jax
import jax.numpy as jnp
from jax.experimental import pallas as pl
from jax.experimental.pallas import tpu as pltpu


# ---------------------------------------------------------------------------
# Pallas kernel: one grid step processes a tile of flattened grid cells.
# ---------------------------------------------------------------------------
def _yolo_loss_kernel(p_ref, tb_ref, tc_ref, m_ref, out_ref, *, S, C):
    f32 = jnp.float32
    tile = p_ref.shape[0]                       # cells handled by this block
    base = pl.program_id(0) * tile              # first flattened cell index

    # ---- load; upcast in-kernel so bf16 inputs only cost bf16 HBM bytes ----
    pt = p_ref[...].astype(f32)                 # (tile, 30) cell-major
    ct = tc_ref[...].astype(f32)                # (tile, 20)
    tb = tb_ref[...].astype(f32)                # (tile, 4)
    m = m_ref[...].astype(f32)                  # (tile, 1)

    # ---- classification SSE per cell, kept cell-major (classes never get
    #      transposed; consumed first so the widest tensors go dead early) ----
    cd = pt[:, 10:30] - ct                      # (tile, 20)
    cls_col = jnp.sum(cd * cd, axis=1, keepdims=True)        # (tile, 1)

    # ---- pack the narrow per-cell features and transpose ONCE to
    #      channel-major: features -> sublanes, cells -> lanes ----
    packed = jnp.concatenate([pt[:, 0:10], tb, m, cls_col], axis=1)  # (tile,16)
    ch = jnp.transpose(packed)                  # (16, tile)

    b0x, b0y, b0w, b0h, b0c = ch[0:1], ch[1:2], ch[2:3], ch[3:4], ch[4:5]
    b1x, b1y, b1w, b1h, b1c = ch[5:6], ch[6:7], ch[7:8], ch[8:9], ch[9:10]
    tx, ty, tw, th = ch[10:11], ch[11:12], ch[12:13], ch[13:14]
    m_row, cls_row = ch[14:15], ch[15:16]

    # ---- validity mask for the padded tail of the last block ----
    lane = jax.lax.broadcasted_iota(jnp.int32, (1, tile), 1) + base
    valid = lane < C
    is_obj = m_row > 0.0
    obj = jnp.logical_and(is_obj, valid)
    noobj = jnp.logical_and(jnp.logical_not(is_obj), valid)

    # ---- best-of-two IoU (diagonal of compute_iou) ----
    inv_S = 1.0 / S
    tcx = tx * inv_S
    tcy = ty * inv_S
    tx1 = tcx - 0.5 * tw
    ty1 = tcy - 0.5 * th
    tx2 = tcx + 0.5 * tw
    ty2 = tcy + 0.5 * th
    t_area = tw * th

    def diag_iou(px, py, pw, ph):
        cx = px * inv_S
        cy = py * inv_S
        iw = jnp.maximum(
            jnp.minimum(cx + 0.5 * pw, tx2) - jnp.maximum(cx - 0.5 * pw, tx1),
            0.0)
        ih = jnp.maximum(
            jnp.minimum(cy + 0.5 * ph, ty2) - jnp.maximum(cy - 0.5 * ph, ty1),
            0.0)
        inter = iw * ih
        # Exact divide on purpose: an approximate reciprocal could flip the
        # best-box select when the two IoUs are nearly equal.  Non-object /
        # padded cells may produce inf/NaN here, but all downstream gating is
        # a true select, so nothing leaks into the sums.
        return inter / (pw * ph + t_area - inter)

    iou0 = diag_iou(b0x, b0y, b0w, b0h)
    iou1 = diag_iou(b1x, b1y, b1w, b1h)
    sel = iou0 > iou1
    best_iou = jnp.where(sel, iou0, iou1)
    bx = jnp.where(sel, b0x, b1x)
    by = jnp.where(sel, b0y, b1y)
    bw = jnp.where(sel, b0w, b1w)
    bh = jnp.where(sel, b0h, b1h)
    bc = jnp.where(sel, b0c, b1c)

    # ---- per-cell loss terms (always select-gated, never mask-multiplied) ---
    eps = 1e-16
    xy_se = (bx - tx) ** 2 + (by - ty) ** 2
    # (sqrt(a) - sqrt(b))^2 == a + b - 2*sqrt(a*b): 2 sqrts instead of 4.
    aw, atw = bw + eps, tw + eps
    ah, ath = bh + eps, th + eps
    wh_se = (aw + atw - 2.0 * jnp.sqrt(aw * atw)) \
          + (ah + ath - 2.0 * jnp.sqrt(ah * ath))

    cls_t = jnp.where(obj, cls_row, 0.0)
    noobj_t = jnp.where(noobj, b0c * b0c + b1c * b1c, 0.0)
    reg_t = jnp.where(obj, xy_se + wh_se, 0.0)
    cont_t = jnp.where(obj, (bc - best_iou) ** 2, 0.0)

    # ---- single fused cross-lane reduction for all four raw sums ----
    stacked = jnp.concatenate([cls_t, noobj_t, reg_t, cont_t], axis=0)  # (4,T)
    partial = jnp.sum(stacked, axis=1, keepdims=True)                   # (4,1)
    row8 = jnp.concatenate([partial, jnp.zeros((4, 1), f32)], axis=0)   # (8,1)
    out_ref[...] = jnp.broadcast_to(row8, (8, 128)).reshape(1, 8, 128)


# ---------------------------------------------------------------------------
# Forward wrapper (glue: free reshapes, pallas_call, scalar epilogue)
# ---------------------------------------------------------------------------
def _yolo_loss_forward(pred_tensor, target_boxes, target_cls, has_object_map,
                       *, S, l_coord, l_noobj, tile_cells):
    N = pred_tensor.shape[0]
    S_in = pred_tensor.shape[1]
    assert S_in == S, "grid size mismatch"
    C = N * S_in * S_in

    # Row-major reshapes only (free); no host-side transpose/slice/cast of the
    # big tensors.  The boolean object map cast is C floats -> noise.
    p2d = pred_tensor.reshape(C, 30)
    tb2d = target_boxes.reshape(C, 4)
    tc2d = target_cls.reshape(C, 20)
    m2d = has_object_map.reshape(C, 1).astype(jnp.float32)

    if C <= tile_cells:
        blk = C                         # single block (block == full dim)
    else:
        blk = tile_cells                # multiple of 8 (asserted in ctor)
    grid = (-(-C // blk),)

    kernel = functools.partial(_yolo_loss_kernel, S=float(S), C=C)

    parts = pl.pallas_call(
        kernel,
        out_shape=jax.ShapeDtypeStruct((grid[0], 8, 128), jnp.float32),
        grid=grid,
        in_specs=[
            pl.BlockSpec((blk, 30), lambda i: (i, 0)),
            pl.BlockSpec((blk, 4), lambda i: (i, 0)),
            pl.BlockSpec((blk, 20), lambda i: (i, 0)),
            pl.BlockSpec((blk, 1), lambda i: (i, 0)),
        ],
        out_specs=pl.BlockSpec((1, 8, 128), lambda i: (i, 0, 0)),
        compiler_params=pltpu.CompilerParams(
            dimension_semantics=("parallel",),
            vmem_limit_bytes=32 * 1024 * 1024),
    )(p2d, tb2d, tc2d, m2d)

    sums = jnp.sum(parts, axis=0)[:4, 0]        # 4 raw (unscaled) sums
    inv_N = 1.0 / N
    cls_loss = inv_N * sums[0]
    no_obj_loss = inv_N * l_noobj * sums[1]
    reg_loss = inv_N * l_coord * sums[2]
    containing_obj_loss = inv_N * sums[3]
    total = cls_loss + no_obj_loss + reg_loss + containing_obj_loss
    return dict(total_loss=total, reg_loss=reg_loss,
                containing_obj_loss=containing_obj_loss,
                no_obj_loss=no_obj_loss, cls_loss=cls_loss)


class YoloLossPallas:
    def __init__(self, S, B, l_coord, l_noobj, tile_cells=2048):
        assert B == 2, "kernel is specialised for B = 2 boxes per cell"
        assert tile_cells % 8 == 0, "tile_cells must be a multiple of 8"
        self.S = int(S)
        self.B = int(B)
        self.l_coord = float(l_coord)
        self.l_noobj = float(l_noobj)
        self.tile_cells = int(tile_cells)
        self._fwd = jax.jit(functools.partial(
            _yolo_loss_forward, S=self.S, l_coord=self.l_coord,
            l_noobj=self.l_noobj, tile_cells=self.tile_cells))

    def __call__(self, pred_tensor, target_boxes, target_cls, has_object_map):
        return self._fwd(pred_tensor, target_boxes, target_cls, has_object_map)


# ---------------------------------------------------------------------------
# Pure-numpy reference mirroring the PyTorch module (boolean-indexing path)
# ---------------------------------------------------------------------------
def _ref_loss(pred, tbox, tcls, hmap, S, l_coord, l_noobj):
    pred = np.asarray(pred, np.float64)
    tbox = np.asarray(tbox, np.float64)
    tcls = np.asarray(tcls, np.float64)
    hmap = np.asarray(hmap, bool)
    N = pred.shape[0]
    inv_N = 1.0 / N
    b0 = pred[..., :5]
    b1 = pred[..., 5:10]
    cls_p = pred[..., 10:]

    cls_loss = inv_N * np.sum(hmap * np.sum((cls_p - tcls) ** 2, -1))
    no_obj = inv_N * l_noobj * (np.sum((~hmap) * b0[..., 4] ** 2)
                                + np.sum((~hmap) * b1[..., 4] ** 2))

    mflat = hmap.reshape(-1)
    mb0 = b0.reshape(-1, 5)[mflat]
    mb1 = b1.reshape(-1, 5)[mflat]
    mtb = tbox.reshape(-1, 4)[mflat]

    def xyxy(b):
        x, y, w, h = b[:, 0] / S, b[:, 1] / S, b[:, 2], b[:, 3]
        return np.stack([x - 0.5 * w, y - 0.5 * h, x + 0.5 * w, y + 0.5 * h], 1)

    def diag_iou(a, b):
        lt = np.maximum(a[:, :2], b[:, :2])
        rb = np.minimum(a[:, 2:], b[:, 2:])
        wh = np.clip(rb - lt, 0, None)
        inter = wh[:, 0] * wh[:, 1]
        a1 = (a[:, 2] - a[:, 0]) * (a[:, 3] - a[:, 1])
        a2 = (b[:, 2] - b[:, 0]) * (b[:, 3] - b[:, 1])
        return inter / (a1 + a2 - inter)

    i0 = diag_iou(xyxy(mb0[:, :4]), xyxy(mtb))
    i1 = diag_iou(xyxy(mb1[:, :4]), xyxy(mtb))
    sel = i0 > i1
    best_iou = np.where(sel, i0, i1)
    best = np.where(sel[:, None], mb0, mb1)

    reg = inv_N * l_coord * (
        np.sum((best[:, :2] - mtb[:, :2]) ** 2)
        + np.sum((np.sqrt(best[:, 2:4] + 1e-16)
                  - np.sqrt(mtb[:, 2:4] + 1e-16)) ** 2))
    contain = inv_N * np.sum((best[:, 4] - best_iou) ** 2)
    total = cls_loss + no_obj + reg + contain
    return np.array([total, reg, contain, no_obj, cls_loss])


if __name__ == "__main__":
    key = jax.random.PRNGKey(0)
    k1, k2, k3, k4 = jax.random.split(key, 4)

    N, S, B = 2, 14, 2              # classic YOLO grid; C = N*S*S = 392 cells
    # Values in [0,1) so widths/heights are positive (post-sigmoid head).
    pred_tensor = jax.random.uniform(k1, (N, S, S, B * 5 + 20), jnp.float32)
    target_boxes = jax.random.uniform(k2, (N, S, S, 4), jnp.float32)
    target_cls = jax.random.uniform(k3, (N, S, S, 20), jnp.float32)
    has_object_map = jax.random.bernoulli(k4, 0.5, (N, S, S))

    # tile_cells=256 -> 2 grid blocks with a ragged, masked tail, exercising
    # the pipelined "parallel" grid path (production default is 2048).
    loss_fn = YoloLossPallas(S=S, B=B, l_coord=5.0, l_noobj=0.5,
                             tile_cells=256)
    loss_dict = loss_fn(pred_tensor, target_boxes, target_cls, has_object_map)
    jax.block_until_ready(loss_dict["total_loss"])

    got = np.array([loss_dict["total_loss"], loss_dict["reg_loss"],
                    loss_dict["containing_obj_loss"], loss_dict["no_obj_loss"],
                    loss_dict["cls_loss"]], dtype=np.float64)
    ref = _ref_loss(np.array(pred_tensor), np.array(target_boxes),
                    np.array(target_cls), np.array(has_object_map),
                    S=S, l_coord=5.0, l_noobj=0.5)
    np.testing.assert_allclose(got, ref, rtol=1e-4, atol=1e-5)
    print("KERNEL_OK")
</pallas_src>

<mosaic_0001>
module attributes {stable_mosaic.version = 11 : i64} {
  func.func @_yolo_loss_kernel(%arg0: i32, %arg1: memref<256x30xf32, #tpu.memory_space<vmem>>, %arg2: memref<256x4xf32, #tpu.memory_space<vmem>>, %arg3: memref<256x20xf32, #tpu.memory_space<vmem>>, %arg4: memref<256x1xf32, #tpu.memory_space<vmem>>, %arg5: memref<1x8x128xf32, #tpu.memory_space<vmem>>) attributes {dimension_semantics = [#tpu.dimension_semantics<parallel>], iteration_bounds = array<i64: 2>, scalar_prefetch = 0 : i64, scratch_operands = 0 : i64, tpu.core_type = #tpu.core_type<tc>, window_params = [{transform_indices = @transform_0, window_bounds = array<i64: 256, 30>}, {transform_indices = @transform_1, window_bounds = array<i64: 256, 4>}, {transform_indices = @transform_2, window_bounds = array<i64: 256, 20>}, {transform_indices = @transform_3, window_bounds = array<i64: 256, 1>}, {transform_indices = @transform_4, window_bounds = array<i64: 1, 8, 128>}]} {
    %c256_i32 = arith.constant 256 : i32
    %0 = arith.muli %arg0, %c256_i32 : i32
    %c0 = arith.constant 0 : index
    %c0_0 = arith.constant 0 : index
    %1 = vector.load %arg1[%c0, %c0_0] : memref<256x30xf32, #tpu.memory_space<vmem>>, vector<256x30xf32>
    %c0_1 = arith.constant 0 : index
    %c0_2 = arith.constant 0 : index
    %2 = vector.load %arg3[%c0_1, %c0_2] : memref<256x20xf32, #tpu.memory_space<vmem>>, vector<256x20xf32>
    %c0_3 = arith.constant 0 : index
    %c0_4 = arith.constant 0 : index
    %3 = vector.load %arg2[%c0_3, %c0_4] : memref<256x4xf32, #tpu.memory_space<vmem>>, vector<256x4xf32>
    %c0_5 = arith.constant 0 : index
    %c0_6 = arith.constant 0 : index
    %4 = vector.load %arg4[%c0_5, %c0_6] : memref<256x1xf32, #tpu.memory_space<vmem>>, vector<256x1xf32>
    %5 = vector.extract_strided_slice %1 {offsets = [0, 10], sizes = [256, 20], strides = [1, 1]} : vector<256x30xf32> to vector<256x20xf32>
    %6 = arith.subf %5, %2 : vector<256x20xf32>
    %7 = arith.mulf %6, %6 : vector<256x20xf32>
    %cst = arith.constant dense<0.000000e+00> : vector<256xf32>
    %8 = vector.multi_reduction <add>, %7, %cst [1] : vector<256x20xf32> to vector<256xf32>
    %9 = vector.shape_cast %8 : vector<256xf32> to vector<256x1xf32>
    %10 = vector.extract_strided_slice %1 {offsets = [0, 0], sizes = [256, 10], strides = [1, 1]} : vector<256x30xf32> to vector<256x10xf32>
    %11 = tpu.concatenate %10, %3, %4, %9 in 1 : vector<256x10xf32>, vector<256x4xf32>, vector<256x1xf32>, vector<256x1xf32> -> vector<256x16xf32>
    %12 = tpu.transpose %11, [1, 0] : vector<256x16xf32> -> vector<16x256xf32>
    %13 = vector.extract_strided_slice %12 {offsets = [0, 0], sizes = [1, 256], strides = [1, 1]} : vector<16x256xf32> to vector<1x256xf32>
    %14 = vector.extract_strided_slice %12 {offsets = [1, 0], sizes = [1, 256], strides = [1, 1]} : vector<16x256xf32> to vector<1x256xf32>
    %15 = vector.extract_strided_slice %12 {offsets = [2, 0], sizes = [1, 256], strides = [1, 1]} : vector<16x256xf32> to vector<1x256xf32>
    %16 = vector.extract_strided_slice %12 {offsets = [3, 0], sizes = [1, 256], strides = [1, 1]} : vector<16x256xf32> to vector<1x256xf32>
    %17 = vector.extract_strided_slice %12 {offsets = [4, 0], sizes = [1, 256], strides = [1, 1]} : vector<16x256xf32> to vector<1x256xf32>
    %18 = vector.extract_strided_slice %12 {offsets = [5, 0], sizes = [1, 256], strides = [1, 1]} : vector<16x256xf32> to vector<1x256xf32>
    %19 = vector.extract_strided_slice %12 {offsets = [6, 0], sizes = [1, 256], strides = [1, 1]} : vector<16x256xf32> to vector<1x256xf32>
    %20 = vector.extract_strided_slice %12 {offsets = [7, 0], sizes = [1, 256], strides = [1, 1]} : vector<16x256xf32> to vector<1x256xf32>
    %21 = vector.extract_strided_slice %12 {offsets = [8, 0], sizes = [1, 256], strides = [1, 1]} : vector<16x256xf32> to vector<1x256xf32>
    %22 = vector.extract_strided_slice %12 {offsets = [9, 0], sizes = [1, 256], strides = [1, 1]} : vector<16x256xf32> to vector<1x256xf32>
    %23 = vector.extract_strided_slice %12 {offsets = [10, 0], sizes = [1, 256], strides = [1, 1]} : vector<16x256xf32> to vector<1x256xf32>
    %24 = vector.extract_strided_slice %12 {offsets = [11, 0], sizes = [1, 256], strides = [1, 1]} : vector<16x256xf32> to vector<1x256xf32>
    %25 = vector.extract_strided_slice %12 {offsets = [12, 0], sizes = [1, 256], strides = [1, 1]} : vector<16x256xf32> to vector<1x256xf32>
    %26 = vector.extract_strided_slice %12 {offsets = [13, 0], sizes = [1, 256], strides = [1, 1]} : vector<16x256xf32> to vector<1x256xf32>
    %27 = vector.extract_strided_slice %12 {offsets = [14, 0], sizes = [1, 256], strides = [1, 1]} : vector<16x256xf32> to vector<1x256xf32>
    %28 = vector.extract_strided_slice %12 {offsets = [15, 0], sizes = [1, 256], strides = [1, 1]} : vector<16x256xf32> to vector<1x256xf32>
    %29 = tpu.iota {dimensions = array<i32: 1>} : vector<1x256xi32>
    %30 = vector.broadcast %0 : i32 to vector<1x256xi32>
    %31 = arith.addi %29, %30 : vector<1x256xi32>
    %c392_i32 = arith.constant 392 : i32
    %32 = vector.broadcast %c392_i32 : i32 to vector<1x256xi32>
    %33 = arith.cmpi slt, %31, %32 : vector<1x256xi32>
    %cst_7 = arith.constant 0.000000e+00 : f32
    %34 = vector.broadcast %cst_7 : f32 to vector<1x256xf32>
    %35 = arith.cmpf ogt, %27, %34 : vector<1x256xf32>
    %36 = arith.andi %35, %33 : vector<1x256xi1>
    %cst_8 = arith.constant dense<true> : vector<1x256xi1>
    %37 = arith.xori %35, %cst_8 : vector<1x256xi1>
    %38 = arith.andi %37, %33 : vector<1x256xi1>
    %cst_9 = arith.constant 0.0714285746 : f32
    %39 = vector.broadcast %cst_9 : f32 to vector<1x256xf32>
    %40 = arith.mulf %23, %39 : vector<1x256xf32>
    %cst_10 = arith.constant 0.0714285746 : f32
    %41 = vector.broadcast %cst_10 : f32 to vector<1x256xf32>
    %42 = arith.mulf %24, %41 : vector<1x256xf32>
    %cst_11 = arith.constant 5.000000e-01 : f32
    %43 = vector.broadcast %cst_11 : f32 to vector<1x256xf32>
    %44 = arith.mulf %43, %25 : vector<1x256xf32>
    %45 = arith.subf %40, %44 : vector<1x256xf32>
    %cst_12 = arith.constant 5.000000e-01 : f32
    %46 = vector.broadcast %cst_12 : f32 to vector<1x256xf32>
    %47 = arith.mulf %46, %26 : vector<1x256xf32>
    %48 = arith.subf %42, %47 : vector<1x256xf32>
    %cst_13 = arith.constant 5.000000e-01 : f32
    %49 = vector.broadcast %cst_13 : f32 to vector<1x256xf32>
    %50 = arith.mulf %49, %25 : vector<1x256xf32>
    %51 = arith.addf %40, %50 : vector<1x256xf32>
    %cst_14 = arith.constant 5.000000e-01 : f32
    %52 = vector.broadcast %cst_14 : f32 to vector<1x256xf32>
    %53 = arith.mulf %52, %26 : vector<1x256xf32>
    %54 = arith.addf %42, %53 : vector<1x256xf32>
    %55 = arith.mulf %25, %26 : vector<1x256xf32>
    %cst_15 = arith.constant 0.0714285746 : f32
    %56 = vector.broadcast %cst_15 : f32 to vector<1x256xf32>
    %57 = arith.mulf %13, %56 : vector<1x256xf32>
    %cst_16 = arith.constant 0.0714285746 : f32
    %58 = vector.broadcast %cst_16 : f32 to vector<1x256xf32>
    %59 = arith.mulf %14, %58 : vector<1x256xf32>
    %cst_17 = arith.constant 5.000000e-01 : f32
    %60 = vector.broadcast %cst_17 : f32 to vector<1x256xf32>
    %61 = arith.mulf %60, %15 : vector<1x256xf32>
    %62 = arith.addf %57, %61 : vector<1x256xf32>
    %63 = arith.minimumf %62, %51 : vector<1x256xf32>
    %cst_18 = arith.constant 5.000000e-01 : f32
    %64 = vector.broadcast %cst_18 : f32 to vector<1x256xf32>
    %65 = arith.mulf %64, %15 : vector<1x256xf32>
    %66 = arith.subf %57, %65 : vector<1x256xf32>
    %67 = arith.maximumf %66, %45 : vector<1x256xf32>
    %68 = arith.subf %63, %67 : vector<1x256xf32>
    %cst_19 = arith.constant 0.000000e+00 : f32
    %69 = vector.broadcast %cst_19 : f32 to vector<1x256xf32>
    %70 = arith.maximumf %68, %69 : vector<1x256xf32>
    %cst_20 = arith.constant 5.000000e-01 : f32
    %71 = vector.broadcast %cst_20 : f32 to vector<1x256xf32>
    %72 = arith.mulf %71, %16 : vector<1x256xf32>
    %73 = arith.addf %59, %72 : vector<1x256xf32>
    %74 = arith.minimumf %73, %54 : vector<1x256xf32>
    %cst_21 = arith.constant 5.000000e-01 : f32
    %75 = vector.broadcast %cst_21 : f32 to vector<1x256xf32>
    %76 = arith.mulf %75, %16 : vector<1x256xf32>
    %77 = arith.subf %59, %76 : vector<1x256xf32>
    %78 = arith.maximumf %77, %48 : vector<1x256xf32>
    %79 = arith.subf %74, %78 : vector<1x256xf32>
    %cst_22 = arith.constant 0.000000e+00 : f32
    %80 = vector.broadcast %cst_22 : f32 to vector<1x256xf32>
    %81 = arith.maximumf %79, %80 : vector<1x256xf32>
    %82 = arith.mulf %70, %81 : vector<1x256xf32>
    %83 = arith.mulf %15, %16 : vector<1x256xf32>
    %84 = arith.addf %83, %55 : vector<1x256xf32>
    %85 = arith.subf %84, %82 : vector<1x256xf32>
    %86 = arith.divf %82, %85 : vector<1x256xf32>
    %cst_23 = arith.constant 0.0714285746 : f32
    %87 = vector.broadcast %cst_23 : f32 to vector<1x256xf32>
    %88 = arith.mulf %18, %87 : vector<1x256xf32>
    %cst_24 = arith.constant 0.0714285746 : f32
    %89 = vector.broadcast %cst_24 : f32 to vector<1x256xf32>
    %90 = arith.mulf %19, %89 : vector<1x256xf32>
    %cst_25 = arith.constant 5.000000e-01 : f32
    %91 = vector.broadcast %cst_25 : f32 to vector<1x256xf32>
    %92 = arith.mulf %91, %20 : vector<1x256xf32>
    %93 = arith.addf %88, %92 : vector<1x256xf32>
    %94 = arith.minimumf %93, %51 : vector<1x256xf32>
    %cst_26 = arith.constant 5.000000e-01 : f32
    %95 = vector.broadcast %cst_26 : f32 to vector<1x256xf32>
    %96 = arith.mulf %95, %20 : vector<1x256xf32>
    %97 = arith.subf %88, %96 : vector<1x256xf32>
    %98 = arith.maximumf %97, %45 : vector<1x256xf32>
    %99 = arith.subf %94, %98 : vector<1x256xf32>
    %cst_27 = arith.constant 0.000000e+00 : f32
    %100 = vector.broadcast %cst_27 : f32 to vector<1x256xf32>
    %101 = arith.maximumf %99, %100 : vector<1x256xf32>
    %cst_28 = arith.constant 5.000000e-01 : f32
    %102 = vector.broadcast %cst_28 : f32 to vector<1x256xf32>
    %103 = arith.mulf %102, %21 : vector<1x256xf32>
    %104 = arith.addf %90, %103 : vector<1x256xf32>
    %105 = arith.minimumf %104, %54 : vector<1x256xf32>
    %cst_29 = arith.constant 5.000000e-01 : f32
    %106 = vector.broadcast %cst_29 : f32 to vector<1x256xf32>
    %107 = arith.mulf %106, %21 : vector<1x256xf32>
    %108 = arith.subf %90, %107 : vector<1x256xf32>
    %109 = arith.maximumf %108, %48 : vector<1x256xf32>
    %110 = arith.subf %105, %109 : vector<1x256xf32>
    %cst_30 = arith.constant 0.000000e+00 : f32
    %111 = vector.broadcast %cst_30 : f32 to vector<1x256xf32>
    %112 = arith.maximumf %110, %111 : vector<1x256xf32>
    %113 = arith.mulf %101, %112 : vector<1x256xf32>
    %114 = arith.mulf %20, %21 : vector<1x256xf32>
    %115 = arith.addf %114, %55 : vector<1x256xf32>
    %116 = arith.subf %115, %113 : vector<1x256xf32>
    %117 = arith.divf %113, %116 : vector<1x256xf32>
    %118 = arith.cmpf ogt, %86, %117 : vector<1x256xf32>
    %119 = arith.select %118, %86, %117 : vector<1x256xi1>, vector<1x256xf32>
    %120 = arith.select %118, %13, %18 : vector<1x256xi1>, vector<1x256xf32>
    %121 = arith.select %118, %14, %19 : vector<1x256xi1>, vector<1x256xf32>
    %122 = arith.select %118, %15, %20 : vector<1x256xi1>, vector<1x256xf32>
    %123 = arith.select %118, %16, %21 : vector<1x256xi1>, vector<1x256xf32>
    %124 = arith.select %118, %17, %22 : vector<1x256xi1>, vector<1x256xf32>
    %125 = arith.subf %120, %23 : vector<1x256xf32>
    %126 = arith.mulf %125, %125 : vector<1x256xf32>
    %127 = arith.subf %121, %24 : vector<1x256xf32>
    %128 = arith.mulf %127, %127 : vector<1x256xf32>
    %129 = arith.addf %126, %128 : vector<1x256xf32>
    %cst_31 = arith.constant 1.000000e-16 : f32
    %130 = vector.broadcast %cst_31 : f32 to vector<1x256xf32>
    %131 = arith.addf %122, %130 : vector<1x256xf32>
    %cst_32 = arith.constant 1.000000e-16 : f32
    %132 = vector.broadcast %cst_32 : f32 to vector<1x256xf32>
    %133 = arith.addf %25, %132 : vector<1x256xf32>
    %cst_33 = arith.constant 1.000000e-16 : f32
    %134 = vector.broadcast %cst_33 : f32 to vector<1x256xf32>
    %135 = arith.addf %123, %134 : vector<1x256xf32>
    %cst_34 = arith.constant 1.000000e-16 : f32
    %136 = vector.broadcast %cst_34 : f32 to vector<1x256xf32>
    %137 = arith.addf %26, %136 : vector<1x256xf32>
    %138 = arith.addf %131, %133 : vector<1x256xf32>
    %139 = arith.mulf %131, %133 : vector<1x256xf32>
    %140 = math.sqrt %139 : vector<1x256xf32>
    %cst_35 = arith.constant 2.000000e+00 : f32
    %141 = vector.broadcast %cst_35 : f32 to vector<1x256xf32>
    %142 = arith.mulf %141, %140 : vector<1x256xf32>
    %143 = arith.subf %138, %142 : vector<1x256xf32>
    %144 = arith.addf %135, %137 : vector<1x256xf32>
    %145 = arith.mulf %135, %137 : vector<1x256xf32>
    %146 = math.sqrt %145 : vector<1x256xf32>
    %cst_36 = arith.constant 2.000000e+00 : f32
    %147 = vector.broadcast %cst_36 : f32 to vector<1x256xf32>
    %148 = arith.mulf %147, %146 : vector<1x256xf32>
    %149 = arith.subf %144, %148 : vector<1x256xf32>
    %150 = arith.addf %143, %149 : vector<1x256xf32>
    %cst_37 = arith.constant 0.000000e+00 : f32
    %151 = vector.broadcast %cst_37 : f32 to vector<1x256xf32>
    %152 = arith.select %36, %28, %151 : vector<1x256xi1>, vector<1x256xf32>
    %153 = arith.mulf %17, %17 : vector<1x256xf32>
    %154 = arith.mulf %22, %22 : vector<1x256xf32>
    %155 = arith.addf %153, %154 : vector<1x256xf32>
    %cst_38 = arith.constant 0.000000e+00 : f32
    %156 = vector.broadcast %cst_38 : f32 to vector<1x256xf32>
    %157 = arith.select %38, %155, %156 : vector<1x256xi1>, vector<1x256xf32>
    %158 = arith.addf %129, %150 : vector<1x256xf32>
    %cst_39 = arith.constant 0.000000e+00 : f32
    %159 = vector.broadcast %cst_39 : f32 to vector<1x256xf32>
    %160 = arith.select %36, %158, %159 : vector<1x256xi1>, vector<1x256xf32>
    %161 = arith.subf %124, %119 : vector<1x256xf32>
    %162 = arith.mulf %161, %161 : vector<1x256xf32>
    %cst_40 = arith.constant 0.000000e+00 : f32
    %163 = vector.broadcast %cst_40 : f32 to vector<1x256xf32>
    %164 = arith.select %36, %162, %163 : vector<1x256xi1>, vector<1x256xf32>
    %165 = tpu.concatenate %152, %157, %160, %164 in 0 : vector<1x256xf32>, vector<1x256xf32>, vector<1x256xf32>, vector<1x256xf32> -> vector<4x256xf32>
    %cst_41 = arith.constant dense<0.000000e+00> : vector<4xf32>
    %166 = vector.multi_reduction <add>, %165, %cst_41 [1] : vector<4x256xf32> to vector<4xf32>
    %167 = vector.shape_cast %166 : vector<4xf32> to vector<4x1xf32>
    %cst_42 = arith.constant 0.000000e+00 : f32
    %168 = vector.broadcast %cst_42 : f32 to vector<4x1xf32>
    %169 = tpu.concatenate %167, %168 in 0 : vector<4x1xf32>, vector<4x1xf32> -> vector<8x1xf32>
    %170 = vector.shape_cast %169 : vector<8x1xf32> to vector<8x1xf32>
    %171 = vector.broadcast %170 : vector<8x1xf32> to vector<8x128xf32>
    %172 = vector.shape_cast %171 : vector<8x128xf32> to vector<1x8x128xf32>
    %c0_43 = arith.constant 0 : index
    %c0_44 = arith.constant 0 : index
    %c0_45 = arith.constant 0 : index
    %173 = vector.load %arg5[%c0_43, %c0_44, %c0_45] : memref<1x8x128xf32, #tpu.memory_space<vmem>>, vector<1x8x128xf32>
    tpu.vector_store %arg5[%c0_43, %c0_44, %c0_45], %172 {strides = array<i32>} : memref<1x8x128xf32, #tpu.memory_space<vmem>>, vector<1x8x128xf32>,
    return
  }
  func.func @transform_0(%arg0: i32) -> (i32, i32) {
    %c0_i32 = arith.constant 0 : i32
    %c0_i32_0 = arith.constant 0 : i32
    return %arg0, %c0_i32 : i32, i32
  }
  func.func @transform_1(%arg0: i32) -> (i32, i32) {
    %c0_i32 = arith.constant 0 : i32
    %c0_i32_0 = arith.constant 0 : i32
    return %arg0, %c0_i32 : i32, i32
  }
  func.func @transform_2(%arg0: i32) -> (i32, i32) {
    %c0_i32 = arith.constant 0 : i32
    %c0_i32_0 = arith.constant 0 : i32
    return %arg0, %c0_i32 : i32, i32
  }
  func.func @transform_3(%arg0: i32) -> (i32, i32) {
    %c0_i32 = arith.constant 0 : i32
    %c0_i32_0 = arith.constant 0 : i32
    return %arg0, %c0_i32 : i32, i32
  }
  func.func @transform_4(%arg0: i32) -> (i32, i32, i32) {
    %c0_i32 = arith.constant 0 : i32
    %c0_i32_0 = arith.constant 0 : i32
    %c0_i32_1 = arith.constant 0 : i32
    return %arg0, %c0_i32, %c0_i32_0 : i32, i32, i32
  }
}

</mosaic_0001>

<bundles_post_ra>
// kernel: _yolo_loss_forward.1
= control target key start
LH: loop header
LB: loop body
LE: loop exit
PB: predicated region body
PF: predicated region fallthrough
CT: control target
= control target key end

     0   :  { %s1874_s15 = smov 0   ;;  %s2848_s0 = inlined_call_operand.vmem [shape: f32[392,30], index: 0, kind: input, shape index: {}]   ;;  %s2849_s1 = inlined_call_operand.vmem [shape: f32[392,4], index: 1, kind: input, shape index: {}]   ;;  %s2850_s2 = inlined_call_operand.vmem [shape: f32[392,20], index: 2, kind: input, shape index: {}]   ;;  %s2851_s3 = inlined_call_operand.vmem [shape: f32[392,1], index: 3, kind: input, shape index: {}]   ;;  %s2852_s4 = inlined_call_operand.vmem [shape: f32[2,8,128], index: 4, kind: output, shape index: {}]  }
   0x1 LB: > { %s1880_s16 = sadd.s32 4294967295, %s1842_s15   ;;  %p1792_p0 = scmp.ge.s32.totalorder %s1842_s15, 1  ;;  %s1842_s15 = sphi %s1874_s15, %s14_s15  }
   0x2   : > { %p228_p1 = scmp.lt.s32.totalorder %s1842_s15, 3 }
   0x4   : > { %p229_p2 = pnand %p1792_p0, %p228_p1 }
   0x6   : > { %232 = sbr.rel (%p229_p2) target bundleno = 1372 (0x55c), region = 36 }
   0xd   : > { %s1793_s17 = sshll.u32 %s1880_s16, 5  ;;  %s1844_s22 = smov 10   ;;  %vm793_vm0 = vcmask 162816   ;;  %vm1146_vm1 = vcmask 80896   ;;  %vm1179_vm2 = vcmask 113664   ;;  %vm1212_vm3 = vcmask 121856  }
   0xe   : > { %p289_p3 = scmp.lt.s32.totalorder %s1793_s17, 48  ;;  %s1845_s26 = smov 118  }
   0xf   : > { %s1846_s7 = smov 14   ;;  %s1802_s8 = sshll.u32 %s1880_s16, 8 }
  0x10   : > { %s2934_s17 = smov (!%p289_p3, %s1793_s17), 48  ;;  %p340_p4 = scmp.lt.s32.totalorder %s1880_s16, 1 }
  0x11   : > { %s1885_s18 = sshll.u32 %s2934_s17, 3 }
  0x12   : > { %s1891_s21 = scalar_lea.vmem %s2850_s2, %s1885_s18  ;;  %s1961_s25 = scalar_lea.vmem %s2848_s0, %s1885_s18 }
  0x13   : > { %v377_v0 = vld [vmem:[%s1891_s21] sm:$0xff]  ;;  %v378_v1 = vld [vmem:[%s1891_s21 + $0x8] sm:$0xff]  ;;  %v395_v4 = vld [vmem:[%s1891_s21 + $0x90] sm:$0xff]  ;;  %s2125_s29 = scalar_lea.vmem %s2849_s1, %s1885_s18  ;;  %s2136_s6 = scalar_lea.vmem %s2851_s3, %s1885_s18 }
  0x14   : > { %505 = vrot.lane.b32.xlu0 %v377_v0, %s1844_s22  ;;  %507 = vrot.lane.b32.xlu1 %v378_v1, %s1844_s22  ;;  %v393_v2 = vld [vmem:[%s1891_s21 + $0x80] sm:$0xff]  ;;  %v394_v3 = vld [vmem:[%s1891_s21 + $0x88] sm:$0xff]  ;;  %s2936_s16 = smov (!%p340_p4, %s1880_s16), 1 }
  0x15   : > { %v379_v5 = vld [vmem:[%s1891_s21 + $0x10] sm:$0xff]  ;;  %v396_v6 = vld [vmem:[%s1891_s21 + $0x98] sm:$0xff]  ;;  %v397_v8 = vld [vmem:[%s1891_s21 + $0xa0] sm:$0xff]  ;;  %s1801_s9 = sshll.u32 %s2936_s16, 3 }
  0x16   : > { %v380_v7 = vld [vmem:[%s1891_s21 + $0x18] sm:$0xff]  ;;  %v381_v9 = vld [vmem:[%s1891_s21 + $0x20] sm:$0xff]  ;;  %v398_v10 = vld [vmem:[%s1891_s21 + $0xa8] sm:$0xff]  ;;  %s343_s12 = scalar_lea.vmem %s2852_s4, %s1801_s9 }
  0x17   : > { %v382_v11 = vld [vmem:[%s1891_s21 + $0x28] sm:$0xff]  ;;  %v399_v12 = vld [vmem:[%s1891_s21 + $0xb0] sm:$0xff]  ;;  %v400_v14 = vld [vmem:[%s1891_s21 + $0xb8] sm:$0xff] }
  0x18   : > { %537 = vrot.lane.b32.xlu0 %v393_v2, %s1844_s22  ;;  %539 = vrot.lane.b32.xlu1 %v394_v3, %s1844_s22  ;;  %v383_v13 = vld [vmem:[%s1891_s21 + $0x30] sm:$0xff]  ;;  %v384_v15 = vld [vmem:[%s1891_s21 + $0x38] sm:$0xff] }
  0x19   : > { %v401_v16 = vld [vmem:[%s1891_s21 + $0xc0] sm:$0xff]  ;;  %v402_v18 = vld [vmem:[%s1891_s21 + $0xc8] sm:$0xff]  ;;  %v403_v20 = vld [vmem:[%s1891_s21 + $0xd0] sm:$0xff] }
  0x1a   : > { %v385_v17 = vld [vmem:[%s1891_s21 + $0x40] sm:$0xff]  ;;  %v386_v19 = vld [vmem:[%s1891_s21 + $0x48] sm:$0xff]  ;;  %v387_v21 = vld [vmem:[%s1891_s21 + $0x50] sm:$0xff] }
  0x1b   : > { %v404_v22 = vld [vmem:[%s1891_s21 + $0xd8] sm:$0xff]  ;;  %v405_v24 = vld [vmem:[%s1891_s21 + $0xe0] sm:$0xff]  ;;  %v406_v26 = vld [vmem:[%s1891_s21 + $0xe8] sm:$0xff] }
  0x1c   : > { %541 = vrot.lane.b32.xlu1 %v395_v4, %s1844_s22  ;;  %509 = vrot.lane.b32.xlu0 %v379_v5, %s1844_s22  ;;  %v388_v23 = vld [vmem:[%s1891_s21 + $0x58] sm:$0xff]  ;;  %v389_v25 = vld [vmem:[%s1891_s21 + $0x60] sm:$0xff] }
  0x1d   : > { %v390_v27 = vld [vmem:[%s1891_s21 + $0x68] sm:$0xff]  ;;  %v407_v28 = vld [vmem:[%s1891_s21 + $0xf0] sm:$0xff]  ;;  %v408_v30 = vld [vmem:[%s1891_s21 + $0xf8] sm:$0xff] }
  0x1e   : > { %v391_v29 = vld [vmem:[%s1891_s21 + $0x70] sm:$0xff]  ;;  %v392_v31 = vld [vmem:[%s1891_s21 + $0x78] sm:$0xff]  ;;  %v1964_v32 = vld [vmem:[%s1961_s25] sm:$0xff] }
  0x1f   : > { %v1967_v33 = vld [vmem:[%s1961_s25 + $0x8] sm:$0xff]  ;;  %v1972_v38 = vld [vmem:[%s1961_s25 + $0x80] sm:$0xff]  ;;  %v1981_v46 = vld [vmem:[%s1961_s25 + $0x90] sm:$0xff] }
  0x20   : > { %543 = vrot.lane.b32.xlu1 %v396_v6, %s1844_s22  ;;  %511 = vrot.lane.b32.xlu0 %v380_v7, %s1844_s22  ;;  %v1975_v39 = vld [vmem:[%s1961_s25 + $0x88] sm:$0xff]  ;;  %v1984_v47 = vld [vmem:[%s1961_s25 + $0x10] sm:$0xff] }
  0x21   : > { %v1991_v54 = vld [vmem:[%s1961_s25 + $0x98] sm:$0xff]  ;;  %v2001_v62 = vld [vmem:[%s1961_s25 + $0xa0] sm:$0xff]  ;;  %v2011_v6 = vld [vmem:[%s1961_s25 + $0xa8] sm:$0xff] }
  0x22   : > { %v1994_v55 = vld [vmem:[%s1961_s25 + $0x18] sm:$0xff]  ;;  %v2004_v63 = vld [vmem:[%s1961_s25 + $0x20] sm:$0xff]  ;;  %v2014_v7 = vld [vmem:[%s1961_s25 + $0x28] sm:$0xff] }
  0x24   : > { %545 = vrot.lane.b32.xlu1 %v397_v8, %s1844_s22  ;;  %513 = vrot.lane.b32.xlu0 %v381_v9, %s1844_s22 }
  0x28   : > { %547 = vrot.lane.b32.xlu1 %v398_v10, %s1844_s22  ;;  %515 = vrot.lane.b32.xlu0 %v382_v11, %s1844_s22 }
  0x2c   : > { %549 = vrot.lane.b32.xlu1 %v399_v12, %s1844_s22  ;;  %517 = vrot.lane.b32.xlu0 %v383_v13, %s1844_s22 }
  0x30   : > { %551 = vrot.lane.b32.xlu1 %v400_v14, %s1844_s22  ;;  %519 = vrot.lane.b32.xlu0 %v384_v15, %s1844_s22  ;;  %v2021_v14 = vld [vmem:[%s1961_s25 + $0xb0] sm:$0xff] }
  0x31   : > { %v2024_v15 = vld [vmem:[%s1961_s25 + $0x30] sm:$0xff] }
  0x34   : > { %553 = vrot.lane.b32.xlu1 %v401_v16, %s1844_s22  ;;  %521 = vrot.lane.b32.xlu0 %v385_v17, %s1844_s22 }
  0x38   : > { %555 = vrot.lane.b32.xlu1 %v402_v18, %s1844_s22  ;;  %523 = vrot.lane.b32.xlu0 %v386_v19, %s1844_s22 }
  0x3c   : > { %557 = vrot.lane.b32.xlu1 %v403_v20, %s1844_s22  ;;  %525 = vrot.lane.b32.xlu0 %v387_v21, %s1844_s22 }
  0x40   : > { %559 = vrot.lane.b32.xlu1 %v404_v22, %s1844_s22  ;;  %527 = vrot.lane.b32.xlu0 %v388_v23, %s1844_s22  ;;  %v2031_v22 = vld [vmem:[%s1961_s25 + $0xb8] sm:$0xff] }
  0x41   : > { %2869 = vst [vmem:[#allocation2_spill] sm:$0xff] %v2031_v22  ;;  %v2034_v23 = vld [vmem:[%s1961_s25 + $0x38] sm:$0xff] }
  0x44   : > { %561 = vrot.lane.b32.xlu1 %v405_v24, %s1844_s22  ;;  %529 = vrot.lane.b32.xlu0 %v389_v25, %s1844_s22 }
  0x48   : > { %563 = vrot.lane.b32.xlu1 %v406_v26, %s1844_s22  ;;  %531 = vrot.lane.b32.xlu0 %v390_v27, %s1844_s22 }
  0x4c   : > { %565 = vrot.lane.b32.xlu1 %v407_v28, %s1844_s22  ;;  %533 = vrot.lane.b32.xlu0 %v391_v29, %s1844_s22 }
  0x50   : > { %567 = vrot.lane.b32.xlu1 %v408_v30, %s1844_s22  ;;  %535 = vrot.lane.b32.xlu0 %v392_v31, %s1844_s22  ;;  %v2041_v30 = vld [vmem:[%s1961_s25 + $0xc0] sm:$0xff] }
  0x51   : > { %2870 = vst [vmem:[#allocation3_spill] sm:$0xff] %v2041_v30  ;;  %v2044_v31 = vld [vmem:[%s1961_s25 + $0x40] sm:$0xff] }
  0x86   : > { %v506_v34 = vpop.permute.xlu0 %505  ;;  %v508_v35 = vpop.permute.xlu1 %507 }
  0x87   : > { %v601_v36 = vsub.f32 %v1964_v32, %v506_v34  ;;  %v602_v37 = vsub.f32 %v1967_v33, %v508_v35 }
  0x89   : > { %v633_v40 = vmul.f32 %v601_v36, %v601_v36  ;;  %v634_v43 = vmul.f32 %v602_v37, %v602_v37 }
  0x8a   : > { %v538_v41 = vpop.permute.xlu0 %537  ;;  %v540_v42 = vpop.permute.xlu1 %539 }
  0x8b   : > { %v617_v44 = vsub.f32 %v1972_v38, %v538_v41  ;;  %697 = vrot.lane.b32.xlu0 %v633_v40, %s1845_s26  ;;  %v618_v45 = vsub.f32 %v1975_v39, %v540_v42  ;;  %v2051_v42 = vld [vmem:[%s1961_s25 + $0xc8] sm:$0xff] }
  0x8c   : > { %2871 = vst [vmem:[#allocation4_spill] sm:$0xff] %v2051_v42 }
  0x8d   : > { %v649_v48 = vmul.f32 %v617_v44, %v617_v44  ;;  %v650_v51 = vmul.f32 %v618_v45, %v618_v45 }
  0x8e   : > { %v542_v49 = vpop.permute.xlu1 %541  ;;  %v510_v50 = vpop.permute.xlu0 %509 }
  0x8f   : > { %729 = vrot.lane.b32.xlu1 %v649_v48, %s1845_s26  ;;  %699 = vrot.lane.b32.xlu0 %v634_v43, %s1845_s26  ;;  %v619_v52 = vsub.f32 %v1981_v46, %v542_v49  ;;  %v603_v53 = vsub.f32 %v1984_v47, %v510_v50  ;;  %v2054_v43 = vld [vmem:[%s1961_s25 + $0x48] sm:$0xff] }
  0x90   : > { %2872 = vst [vmem:[#allocation5_spill] sm:$0xff] %v2054_v43 }
  0x91   : > { %v635_v56 = vmul.f32 %v603_v53, %v603_v53  ;;  %v651_v59 = vmul.f32 %v619_v52, %v619_v52  ;;  %v2061_v52 = vld [vmem:[%s1961_s25 + $0xd0] sm:$0xff] }
  0x92   : > { %v544_v57 = vpop.permute.xlu1 %543  ;;  %v512_v58 = vpop.permute.xlu0 %511  ;;  %2873 = vst [vmem:[#allocation6_spill] sm:$0xff] %v2061_v52  ;;  %v2064_v53 = vld [vmem:[%s1961_s25 + $0x50] sm:$0xff] }
  0x93   : > { %731 = vrot.lane.b32.xlu1 %v650_v51, %s1845_s26  ;;  %v620_v60 = vsub.f32 %v1991_v54, %v544_v57  ;;  %v604_v61 = vsub.f32 %v1994_v55, %v512_v58  ;;  %701 = vrot.lane.b32.xlu0 %v635_v56, %s1845_s26  ;;  %2874 = vst [vmem:[#allocation7_spill] sm:$0xff] %v2064_v53 }
  0x95   : > { %v636_v0 = vmul.f32 %v604_v61, %v604_v61  ;;  %v652_v3 = vmul.f32 %v620_v60, %v620_v60 }
  0x96   : > { %v546_v1 = vpop.permute.xlu1 %545  ;;  %v514_v2 = vpop.permute.xlu0 %513 }
  0x97   : > { %733 = vrot.lane.b32.xlu1 %v651_v59, %s1845_s26  ;;  %v621_v4 = vsub.f32 %v2001_v62, %v546_v1  ;;  %v605_v5 = vsub.f32 %v2004_v63, %v514_v2  ;;  %703 = vrot.lane.b32.xlu0 %v636_v0, %s1845_s26  ;;  %v2071_v0 = vld [vmem:[%s1961_s25 + $0xd8] sm:$0xff] }
  0x98   : > { %2875 = vst [vmem:[#allocation8_spill] sm:$0xff] %v2071_v0  ;;  %v2074_v1 = vld [vmem:[%s1961_s25 + $0x58] sm:$0xff] }
  0x99   : > { %v637_v8 = vmul.f32 %v605_v5, %v605_v5  ;;  %v653_v11 = vmul.f32 %v621_v4, %v621_v4  ;;  %2876 = vst [vmem:[#allocation9_spill] sm:$0xff] %v2074_v1 }
  0x9a   : > { %v548_v9 = vpop.permute.xlu1 %547  ;;  %v516_v10 = vpop.permute.xlu0 %515 }
  0x9b   : > { %735 = vrot.lane.b32.xlu1 %v652_v3, %s1845_s26  ;;  %v622_v12 = vsub.f32 %v2011_v6, %v548_v9  ;;  %v606_v13 = vsub.f32 %v2014_v7, %v516_v10  ;;  %705 = vrot.lane.b32.xlu0 %v637_v8, %s1845_s26  ;;  %v2081_v10 = vld [vmem:[%s1961_s25 + $0xe0] sm:$0xff] }
  0x9c   : > { %2877 = vst [vmem:[#allocation10_spill] sm:$0xff] %v2081_v10 }
  0x9d   : > { %v638_v16 = vmul.f32 %v606_v13, %v606_v13  ;;  %v654_v19 = vmul.f32 %v622_v12, %v622_v12 }
  0x9e   : > { %v550_v17 = vpop.permute.xlu1 %549  ;;  %v518_v18 = vpop.permute.xlu0 %517 }
  0x9f   : > { %737 = vrot.lane.b32.xlu1 %v653_v11, %s1845_s26  ;;  %v623_v20 = vsub.f32 %v2021_v14, %v550_v17  ;;  %v607_v21 = vsub.f32 %v2024_v15, %v518_v18  ;;  %707 = vrot.lane.b32.xlu0 %v638_v16, %s1845_s26  ;;  %v2084_v11 = vld [vmem:[%s1961_s25 + $0x60] sm:$0xff] }
  0xa0   : > { %2878 = vst [vmem:[#allocation11_spill] sm:$0xff] %v2084_v11 }
  0xa1   : > { %v639_v24 = vmul.f32 %v607_v21, %v607_v21  ;;  %v655_v27 = vmul.f32 %v623_v20, %v623_v20  ;;  %v2091_v20 = vld [vmem:[%s1961_s25 + $0xe8] sm:$0xff] }
  0xa2   : > { %v552_v25 = vpop.permute.xlu1 %551  ;;  %v520_v26 = vpop.permute.xlu0 %519  ;;  %2879 = vst [vmem:[#allocation12_spill] sm:$0xff] %v2091_v20  ;;  %v2094_v21 = vld [vmem:[%s1961_s25 + $0x68] sm:$0xff] }
  0xa3   : > { %739 = vrot.lane.b32.xlu1 %v654_v19, %s1845_s26  ;;  %v624_v28 = vsub.f32 %v2031_v22, %v552_v25  ;;  %v608_v29 = vsub.f32 %v2034_v23, %v520_v26  ;;  %709 = vrot.lane.b32.xlu0 %v639_v24, %s1845_s26  ;;  %2880 = vst [vmem:[#allocation13_spill] sm:$0xff] %v2094_v21 }
  0xa5   : > { %v640_v34 = vmul.f32 %v608_v29, %v608_v29  ;;  %v656_v37 = vmul.f32 %v624_v28, %v624_v28 }
  0xa6   : > { %v554_v35 = vpop.permute.xlu1 %553  ;;  %v522_v36 = vpop.permute.xlu0 %521 }
  0xa7   : > { %741 = vrot.lane.b32.xlu1 %v655_v27, %s1845_s26  ;;  %711 = vrot.lane.b32.xlu0 %v640_v34, %s1845_s26  ;;  %v625_v40 = vsub.f32 %v2041_v30, %v554_v35  ;;  %v609_v41 = vsub.f32 %v2044_v31, %v522_v36  ;;  %v2101_v34 = vld [vmem:[%s1961_s25 + $0xf0] sm:$0xff] }
  0xa8   : > { %2881 = vst [vmem:[#allocation14_spill] sm:$0xff] %v2101_v34  ;;  %v2104_v35 = vld [vmem:[%s1961_s25 + $0x70] sm:$0xff] }
  0xa9   : > { %v641_v44 = vmul.f32 %v609_v41, %v609_v41  ;;  %v657_v49 = vmul.f32 %v625_v40, %v625_v40  ;;  %2882 = vst [vmem:[#allocation15_spill] sm:$0xff] %v2104_v35 }
  0xaa   : > { %v556_v45 = vpop.permute.xlu1 %555  ;;  %v524_v48 = vpop.permute.xlu0 %523 }
  0xab   : > { %743 = vrot.lane.b32.xlu1 %v656_v37, %s1845_s26  ;;  %v626_v50 = vsub.f32 %v2051_v42, %v556_v45  ;;  %v610_v51 = vsub.f32 %v2054_v43, %v524_v48  ;;  %713 = vrot.lane.b32.xlu0 %v641_v44, %s1845_s26  ;;  %v2111_v48 = vld [vmem:[%s1961_s25 + $0xf8] sm:$0xff] }
  0xac   : > { %2883 = vst [vmem:[#allocation16_spill] sm:$0xff] %v2111_v48 }
  0xad   : > { %v642_v56 = vmul.f32 %v610_v51, %v610_v51  ;;  %v658_v59 = vmul.f32 %v626_v50, %v626_v50 }
  0xae   : > { %v558_v57 = vpop.permute.xlu1 %557  ;;  %v526_v58 = vpop.permute.xlu0 %525 }
  0xaf   : > { %745 = vrot.lane.b32.xlu1 %v657_v49, %s1845_s26  ;;  %v627_v60 = vsub.f32 %v2061_v52, %v558_v57  ;;  %v611_v61 = vsub.f32 %v2064_v53, %v526_v58  ;;  %715 = vrot.lane.b32.xlu0 %v642_v56, %s1845_s26  ;;  %v2114_v49 = vld [vmem:[%s1961_s25 + $0x78] sm:$0xff]  ;;  %v454_v53 = vld [vmem:[%s2136_s6 + $0x68] sm:$0xff] }
  0xb0   : > { %2884 = vst [vmem:[#allocation17_spill] sm:$0xff] %v2114_v49 }
  0xb1   : > { %v643_v2 = vmul.f32 %v611_v61, %v611_v61  ;;  %v659_v5 = vmul.f32 %v627_v60, %v627_v60 }
  0xb2   : > { %v560_v3 = vpop.permute.xlu1 %559  ;;  %v528_v4 = vpop.permute.xlu0 %527 }
  0xb3   : > { %747 = vrot.lane.b32.xlu1 %v658_v59, %s1845_s26  ;;  %v628_v8 = vsub.f32 %v2071_v0, %v560_v3  ;;  %v612_v9 = vsub.f32 %v2074_v1, %v528_v4  ;;  %717 = vrot.lane.b32.xlu0 %v643_v2, %s1845_s26  ;;  %v425_v2 = vld [vmem:[%s2125_s29 + $0x80] sm:$0xff]  ;;  %v422_v1 = vld [vmem:[%s2125_s29 + $0x68] sm:$0xff] }
  0xb4   : > { %v409_v3 = vld [vmem:[%s2125_s29] sm:$0xff] }
  0xb5   : > { %v644_v12 = vmul.f32 %v612_v9, %v612_v9  ;;  %v660_v17 = vmul.f32 %v628_v8, %v628_v8  ;;  %v441_v4 = vld [vmem:[%s2136_s6] sm:$0xff] }
  0xb6   : > { %v562_v13 = vpop.permute.xlu1 %561  ;;  %v530_v16 = vpop.permute.xlu0 %529 }
  0xb7   : > { %749 = vrot.lane.b32.xlu1 %v659_v5, %s1845_s26  ;;  %v629_v18 = vsub.f32 %v2081_v10, %v562_v13  ;;  %v613_v19 = vsub.f32 %v2084_v11, %v530_v16  ;;  %719 = vrot.lane.b32.xlu0 %v644_v12, %s1845_s26  ;;  %v457_v5 = vld [vmem:[%s2136_s6 + $0x80] sm:$0xff] }
  0xb8   : > { %v421_v11 = vld [vmem:[%s2125_s29 + $0x60] sm:$0xff] }
  0xb9   : > { %v645_v24 = vmul.f32 %v613_v19, %v613_v19  ;;  %v661_v27 = vmul.f32 %v629_v18, %v629_v18 }
  0xba   : > { %v564_v25 = vpop.permute.xlu1 %563  ;;  %v532_v26 = vpop.permute.xlu0 %531 }
  0xbb   : > { %751 = vrot.lane.b32.xlu1 %v660_v17, %s1845_s26  ;;  %v630_v28 = vsub.f32 %v2091_v20, %v564_v25  ;;  %v614_v29 = vsub.f32 %v2094_v21, %v532_v26  ;;  %721 = vrot.lane.b32.xlu0 %v645_v24, %s1845_s26  ;;  %v452_v21 = vld [vmem:[%s2136_s6 + $0x58] sm:$0xff] }
  0xbd   : > { %v646_v36 = vmul.f32 %v614_v29, %v614_v29  ;;  %v662_v41 = vmul.f32 %v630_v28, %v630_v28 }
  0xbe   : > { %v566_v37 = vpop.permute.xlu1 %565  ;;  %v534_v40 = vpop.permute.xlu0 %533 }
  0xbf   : > { %753 = vrot.lane.b32.xlu1 %v661_v27, %s1845_s26  ;;  %v631_v44 = vsub.f32 %v2101_v34, %v566_v37  ;;  %v615_v45 = vsub.f32 %v2104_v35, %v534_v40  ;;  %723 = vrot.lane.b32.xlu0 %v646_v36, %s1845_s26  ;;  %v420_v35 = vld [vmem:[%s2125_s29 + $0x58] sm:$0xff] }
  0xc1   : > { %v647_v50 = vmul.f32 %v615_v45, %v615_v45  ;;  %v663_v57 = vmul.f32 %v631_v44, %v631_v44 }
  0xc2   : > { %v568_v51 = vpop.permute.xlu1 %567  ;;  %v536_v56 = vpop.permute.xlu0 %535 }
  0xc3   : > { %755 = vrot.lane.b32.xlu1 %v662_v41, %s1845_s26  ;;  %v632_v58 = vsub.f32 %v2111_v48, %v568_v51  ;;  %v616_v59 = vsub.f32 %v2114_v49, %v536_v56  ;;  %725 = vrot.lane.b32.xlu0 %v647_v50, %s1845_s26  ;;  %v419_v49 = vld [vmem:[%s2125_s29 + $0x50] sm:$0xff] }
  0xc5   : > { %v648_v60 = vmul.f32 %v616_v59, %v616_v59  ;;  %v664_v61 = vmul.f32 %v632_v58, %v632_v58 }
  0xc7   : > { %757 = vrot.lane.b32.xlu1 %v663_v57, %s1845_s26  ;;  %727 = vrot.lane.b32.xlu0 %v648_v60, %s1845_s26 }
  0xcb   : > { %759 = vrot.lane.b32.xlu1 %v664_v61, %s1845_s26  ;;  %954 = vrot.lane.b32.xlu0 %v425_v2, %s1844_s22 }
  0xcf   : > { %922 = vrot.lane.b32.xlu1 %v409_v3, %s1844_s22 }
  0xd3   : > { %1050 = vrot.lane.b32.xlu1 %v441_v4, %s1846_s7 }
  0xd7   : > { %1082 = vrot.lane.b32.xlu1 %v457_v5, %s1846_s7 }
  0xfd   : > { %v698_v8 = vpop.permute.xlu0 %697 }
  0xfe   : > { %v794_v9 = vsel %vm793_vm0, %v698_v8, 0.0  ;;  %v426_v8 = vld [vmem:[%s2125_s29 + $0x88] sm:$0xff] }
  0xff   : > { %795 = vadd.xlane.f32.xlu0 %v794_v9  ;;  %v458_v9 = vld [vmem:[%s2136_s6 + $0x88] sm:$0xff] }
 0x101   : > { %v730_v12 = vpop.permute.xlu1 %729  ;;  %v700_v13 = vpop.permute.xlu0 %699 }
 0x102   : > { %v842_v16 = vsel %vm793_vm0, %v730_v12, 0.0  ;;  %v797_v17 = vsel %vm793_vm0, %v700_v13, 0.0  ;;  %v410_v12 = vld [vmem:[%s2125_s29 + $0x8] sm:$0xff] }
 0x103   : > { %843 = vadd.xlane.f32.xlu1 %v842_v16  ;;  %798 = vadd.xlane.f32.xlu0 %v797_v17  ;;  %v442_v13 = vld [vmem:[%s2136_s6 + $0x8] sm:$0xff] }
 0x105   : > { %v732_v18 = vpop.permute.xlu1 %731  ;;  %v702_v19 = vpop.permute.xlu0 %701 }
 0x106   : > { %v845_v24 = vsel %vm793_vm0, %v732_v18, 0.0  ;;  %v800_v25 = vsel %vm793_vm0, %v702_v19, 0.0 }
 0x107   : > { %846 = vadd.xlane.f32.xlu0 %v845_v24  ;;  %801 = vadd.xlane.f32.xlu1 %v800_v25  ;;  %v427_v24 = vld [vmem:[%s2125_s29 + $0x90] sm:$0xff] }
 0x108   : > { %v459_v25 = vld [vmem:[%s2136_s6 + $0x90] sm:$0xff] }
 0x109   : > { %v734_v26 = vpop.permute.xlu1 %733  ;;  %v704_v27 = vpop.permute.xlu0 %703 }
 0x10a   : > { %v848_v28 = vsel %vm793_vm0, %v734_v26, 0.0  ;;  %v803_v29 = vsel %vm793_vm0, %v704_v27, 0.0  ;;  %v411_v26 = vld [vmem:[%s2125_s29 + $0x10] sm:$0xff] }
 0x10b   : > { %849 = vadd.xlane.f32.xlu0 %v848_v28  ;;  %804 = vadd.xlane.f32.xlu1 %v803_v29  ;;  %v443_v27 = vld [vmem:[%s2136_s6 + $0x10] sm:$0xff] }
 0x10d   : > { %v736_v36 = vpop.permute.xlu1 %735  ;;  %v706_v37 = vpop.permute.xlu0 %705 }
 0x10e   : > { %v851_v40 = vsel %vm793_vm0, %v736_v36, 0.0  ;;  %v806_v41 = vsel %vm793_vm0, %v706_v37, 0.0 }
 0x10f   : > { %852 = vadd.xlane.f32.xlu0 %v851_v40  ;;  %807 = vadd.xlane.f32.xlu1 %v806_v41  ;;  %v428_v40 = vld [vmem:[%s2125_s29 + $0x98] sm:$0xff] }
 0x110   : > { %v460_v41 = vld [vmem:[%s2136_s6 + $0x98] sm:$0xff] }
 0x111   : > { %v738_v44 = vpop.permute.xlu1 %737  ;;  %v708_v45 = vpop.permute.xlu0 %707 }
 0x112   : > { %v854_v50 = vsel %vm793_vm0, %v738_v44, 0.0  ;;  %v809_v51 = vsel %vm793_vm0, %v708_v45, 0.0  ;;  %v412_v44 = vld [vmem:[%s2125_s29 + $0x18] sm:$0xff] }
 0x113   : > { %855 = vadd.xlane.f32.xlu0 %v854_v50  ;;  %810 = vadd.xlane.f32.xlu1 %v809_v51  ;;  %v444_v45 = vld [vmem:[%s2136_s6 + $0x18] sm:$0xff] }
 0x115   : > { %v740_v56 = vpop.permute.xlu1 %739  ;;  %v710_v57 = vpop.permute.xlu0 %709 }
 0x116   : > { %v857_v58 = vsel %vm793_vm0, %v740_v56, 0.0  ;;  %v812_v59 = vsel %vm793_vm0, %v710_v57, 0.0 }
 0x117   : > { %858 = vadd.xlane.f32.xlu0 %v857_v58  ;;  %813 = vadd.xlane.f32.xlu1 %v812_v59  ;;  %v429_v58 = vld [vmem:[%s2125_s29 + $0xa0] sm:$0xff] }
 0x118   : > { %v461_v59 = vld [vmem:[%s2136_s6 + $0xa0] sm:$0xff] }
 0x119   : > { %v742_v60 = vpop.permute.xlu1 %741  ;;  %v712_v61 = vpop.permute.xlu0 %711 }
 0x11a   : > { %v860_v2 = vsel %vm793_vm0, %v742_v60, 0.0  ;;  %v815_v3 = vsel %vm793_vm0, %v712_v61, 0.0  ;;  %v413_v60 = vld [vmem:[%s2125_s29 + $0x20] sm:$0xff] }
 0x11b   : > { %861 = vadd.xlane.f32.xlu0 %v860_v2  ;;  %v445_v61 = vld [vmem:[%s2136_s6 + $0x20] sm:$0xff] }
 0x11d   : > { %v744_v4 = vpop.permute.xlu1 %743  ;;  %v714_v16 = vpop.permute.xlu0 %713 }
 0x11e   : > { %v863_v5 = vsel %vm793_vm0, %v744_v4, 0.0  ;;  %v818_v19 = vsel %vm793_vm0, %v714_v16, 0.0 }
 0x11f   : > { %864 = vadd.xlane.f32.xlu1 %v863_v5  ;;  %816 = vadd.xlane.f32.xlu0 %v815_v3 }
 0x121   : > { %v746_v17 = vpop.permute.xlu1 %745  ;;  %v716_v28 = vpop.permute.xlu0 %715 }
 0x122   : > { %v866_v18 = vsel %vm793_vm0, %v746_v17, 0.0  ;;  %v821_v37 = vsel %vm793_vm0, %v716_v28, 0.0 }
 0x125   : > { %v748_v29 = vpop.permute.xlu1 %747  ;;  %v718_v50 = vpop.permute.xlu0 %717 }
 0x126   : > { %v869_v36 = vsel %vm793_vm0, %v748_v29, 0.0  ;;  %v824_v57 = vsel %vm793_vm0, %v718_v50, 0.0 }
 0x129   : > { %v750_v51 = vpop.permute.xlu1 %749  ;;  %v720_v2 = vpop.permute.xlu0 %719 }
 0x12a   : > { %v872_v56 = vsel %vm793_vm0, %v750_v51, 0.0  ;;  %v827_v5 = vsel %vm793_vm0, %v720_v2, 0.0  ;;  %v433_v2 = vld [vmem:[%s2125_s29 + $0xc0] sm:$0xff] }
 0x12d   : > { %v752_v3 = vpop.permute.xlu1 %751  ;;  %v722_v16 = vpop.permute.xlu0 %721 }
 0x12e   : > { %v875_v4 = vsel %vm793_vm0, %v752_v3, 0.0 }
 0x130   : > { %956 = vrot.lane.b32.xlu1 %v426_v8, %s1844_s22  ;;  %v430_v8 = vld [vmem:[%s2125_s29 + $0xa8] sm:$0xff] }
 0x131   : > { %v754_v17 = vpop.permute.xlu1 %753  ;;  %v724_v28 = vpop.permute.xlu0 %723 }
 0x134   : > { %1084 = vrot.lane.b32.xlu1 %v458_v9, %s1846_s7  ;;  %v462_v9 = vld [vmem:[%s2136_s6 + $0xa8] sm:$0xff] }
 0x135   : > { %924 = vrot.lane.b32.xlu0 %v410_v12, %s1844_s22  ;;  %v414_v12 = vld [vmem:[%s2125_s29 + $0x28] sm:$0xff]  ;;  %v756_v29 = vpop.permute.xlu1 %755  ;;  %v726_v50 = vpop.permute.xlu0 %725 }
 0x139   : > { %1052 = vrot.lane.b32.xlu0 %v442_v13, %s1846_s7  ;;  %v446_v13 = vld [vmem:[%s2136_s6 + $0x28] sm:$0xff]  ;;  %v758_v51 = vpop.permute.xlu1 %757 }
 0x158   : > { %867 = vadd.xlane.f32.xlu1 %v866_v18  ;;  %819 = vadd.xlane.f32.xlu0 %v818_v19  ;;  %v878_v18 = vsel %vm793_vm0, %v754_v17, 0.0  ;;  %v830_v19 = vsel %vm793_vm0, %v722_v16, 0.0 }
 0x169   : > { %958 = vrot.lane.b32.xlu1 %v427_v24, %s1844_s22  ;;  %v431_v24 = vld [vmem:[%s2125_s29 + $0xb0] sm:$0xff] }
 0x16d   : > { %1086 = vrot.lane.b32.xlu1 %v459_v25, %s1846_s7  ;;  %v463_v25 = vld [vmem:[%s2136_s6 + $0xb0] sm:$0xff] }
 0x16e   : > { %926 = vrot.lane.b32.xlu0 %v411_v26, %s1844_s22  ;;  %v415_v26 = vld [vmem:[%s2125_s29 + $0x30] sm:$0xff] }
 0x172   : > { %1054 = vrot.lane.b32.xlu0 %v443_v27, %s1846_s7  ;;  %v447_v27 = vld [vmem:[%s2136_s6 + $0x30] sm:$0xff] }
 0x191   : > { %870 = vadd.xlane.f32.xlu1 %v869_v36  ;;  %822 = vadd.xlane.f32.xlu0 %v821_v37  ;;  %v881_v36 = vsel %vm793_vm0, %v756_v29, 0.0  ;;  %v833_v37 = vsel %vm793_vm0, %v724_v28, 0.0 }
 0x1a2   : > { %960 = vrot.lane.b32.xlu1 %v428_v40, %s1844_s22  ;;  %v432_v40 = vld [vmem:[%s2125_s29 + $0xb8] sm:$0xff] }
 0x1a6   : > { %1088 = vrot.lane.b32.xlu1 %v460_v41, %s1846_s7  ;;  %v464_v41 = vld [vmem:[%s2136_s6 + $0xb8] sm:$0xff] }
 0x1a7   : > { %928 = vrot.lane.b32.xlu0 %v412_v44, %s1844_s22  ;;  %v416_v44 = vld [vmem:[%s2125_s29 + $0x38] sm:$0xff] }
 0x1ab   : > { %1056 = vrot.lane.b32.xlu0 %v444_v45, %s1846_s7  ;;  %v448_v45 = vld [vmem:[%s2136_s6 + $0x38] sm:$0xff] }
 0x1ca   : > { %873 = vadd.xlane.f32.xlu1 %v872_v56  ;;  %825 = vadd.xlane.f32.xlu0 %v824_v57  ;;  %v884_v56 = vsel %vm793_vm0, %v758_v51, 0.0  ;;  %v836_v57 = vsel %vm793_vm0, %v726_v50, 0.0  ;;  %v434_v51 = vld [vmem:[%s2125_s29 + $0xc8] sm:$0xff] }
 0x1db   : > { %962 = vrot.lane.b32.xlu1 %v429_v58, %s1844_s22  ;;  %v728_v58 = vpop.permute.xlu0 %727 }
 0x1df   : > { %1090 = vrot.lane.b32.xlu1 %v461_v59, %s1846_s7  ;;  %v2229_v59 = vpop.permute.xlu0 %954 }
 0x1e0   : > { %930 = vrot.lane.b32.xlu0 %v413_v60, %s1844_s22  ;;  %v760_v60 = vpop.permute.xlu1 %759 }
 0x1e1   : > { %v887_v29 = vsel %vm793_vm0, %v760_v60, 0.0  ;;  %v418_v60 = vld [vmem:[%s2125_s29 + $0x48] sm:$0xff] }
 0x1e4   : > { %1058 = vrot.lane.b32.xlu0 %v445_v61, %s1846_s7  ;;  %v2231_v61 = vpop.xlane.xlu0 %795  ;;  %v2235_v3 = vpop.permute.xlu1 %922 }
 0x203   : > { %876 = vadd.xlane.f32.xlu1 %v875_v4  ;;  %828 = vadd.xlane.f32.xlu0 %v827_v5  ;;  %v465_v4 = vld [vmem:[%s2136_s6 + $0xc0] sm:$0xff] }
 0x204   : > { %v417_v5 = vld [vmem:[%s2125_s29 + $0x40] sm:$0xff] }
 0x214   : > { %964 = vrot.lane.b32.xlu1 %v430_v8, %s1844_s22  ;;  %v2239_v8 = vpop.xlane.xlu0 %798 }
 0x218   : > { %1092 = vrot.lane.b32.xlu1 %v462_v9, %s1846_s7  ;;  %v449_v9 = vld [vmem:[%s2136_s6 + $0x40] sm:$0xff] }
 0x219   : > { %932 = vrot.lane.b32.xlu0 %v414_v12, %s1844_s22  ;;  %v2244_v12 = vpop.permute.xlu1 %1050 }
 0x21d   : > { %1060 = vrot.lane.b32.xlu0 %v446_v13, %s1846_s7  ;;  %v2246_v13 = vpop.xlane.xlu0 %846  ;;  %v2249_v16 = vpop.permute.xlu1 %1082 }
 0x221   : > { %v2251_v17 = vpop.xlane.xlu0 %849 }
 0x23c   : > { %879 = vadd.xlane.f32.xlu1 %v878_v18  ;;  %831 = vadd.xlane.f32.xlu0 %v830_v19  ;;  %v2253_v18 = vpop.xlane.xlu1 %843 }
 0x240   : > { %v2255_v19 = vpop.xlane.xlu1 %801 }
 0x24d   : > { %966 = vrot.lane.b32.xlu1 %v431_v24, %s1844_s22  ;;  %v2257_v24 = vpop.xlane.xlu0 %852 }
 0x251   : > { %1094 = vrot.lane.b32.xlu1 %v463_v25, %s1846_s7  ;;  %v2259_v25 = vpop.xlane.xlu1 %804 }
 0x252   : > { %934 = vrot.lane.b32.xlu0 %v415_v26, %s1844_s22  ;;  %v2261_v26 = vpop.xlane.xlu0 %855 }
 0x256   : > { %1062 = vrot.lane.b32.xlu0 %v447_v27, %s1846_s7  ;;  %v2263_v27 = vpop.xlane.xlu1 %807  ;;  %v2265_v28 = vpop.xlane.xlu0 %858 }
 0x275   : > { %882 = vadd.xlane.f32.xlu1 %v881_v36  ;;  %834 = vadd.xlane.f32.xlu0 %v833_v37  ;;  %v839_v36 = vsel %vm793_vm0, %v728_v58, 0.0  ;;  %v2269_v37 = vpop.xlane.xlu1 %810  ;;  %v466_v58 = vld [vmem:[%s2136_s6 + $0xc8] sm:$0xff] }
 0x286   : > { %968 = vrot.lane.b32.xlu1 %v432_v40, %s1844_s22  ;;  %v2271_v40 = vpop.xlane.xlu0 %861 }
 0x287   : > { %2885 = vst [vmem:[#allocation18_spill] sm:$0xff] %v2271_v40 }
 0x28a   : > { %1096 = vrot.lane.b32.xlu1 %v464_v41, %s1846_s7  ;;  %v2273_v41 = vpop.xlane.xlu1 %813 }
 0x28b   : > { %936 = vrot.lane.b32.xlu0 %v416_v44, %s1844_s22  ;;  %v2275_v44 = vpop.xlane.xlu0 %816 }
 0x28f   : > { %1064 = vrot.lane.b32.xlu0 %v448_v45, %s1846_s7  ;;  %v2277_v45 = vpop.xlane.xlu1 %864  ;;  %v2279_v50 = vpop.permute.xlu0 %924 }
 0x290   : > { %2886 = vst [vmem:[#allocation19_spill] sm:$0xff] %v2277_v45 }
 0x2ae   : > { %885 = vadd.xlane.f32.xlu1 %v884_v56  ;;  %837 = vadd.xlane.f32.xlu0 %v836_v57  ;;  %v2282_v56 = vpop.permute.xlu1 %956  ;;  %v2284_v57 = vpop.permute.xlu0 %1052 }
 0x2bf   : > { %970 = vrot.lane.b32.xlu1 %v433_v2, %s1844_s22  ;;  %v2289_v2 = vpop.xlane.xlu0 %819 }
 0x2c0   : > { %2887 = vst [vmem:[#allocation20_spill] sm:$0xff] %v2289_v2 }
 0x2c3   : > { %1098 = vrot.lane.b32.xlu1 %v465_v4, %s1846_s7  ;;  %v435_v4 = vld [vmem:[%s2125_s29 + $0xd0] sm:$0xff] }
 0x2c4   : > { %938 = vrot.lane.b32.xlu0 %v417_v5, %s1844_s22  ;;  %v2294_v5 = vpop.permute.xlu1 %1084 }
 0x2c8   : > { %1066 = vrot.lane.b32.xlu0 %v449_v9, %s1846_s7  ;;  %v450_v9 = vld [vmem:[%s2136_s6 + $0x48] sm:$0xff] }
 0x2e7   : > { %888 = vadd.xlane.f32.xlu1 %v887_v29  ;;  %840 = vadd.xlane.f32.xlu0 %v839_v36  ;;  %v467_v29 = vld [vmem:[%s2136_s6 + $0xd0] sm:$0xff]  ;;  %v2300_v36 = vpop.xlane.xlu1 %867 }
 0x2e8   : > { %2888 = vst [vmem:[#allocation21_spill] sm:$0xff] %v2300_v36 }
 0x2eb   : > { %v2309_v48 = vpop.permute.xlu1 %958 }
 0x2f8   : > { %972 = vrot.lane.b32.xlu1 %v434_v51, %s1844_s22  ;;  %v2302_v51 = vpop.permute.xlu0 %926 }
 0x2fc   : > { %1100 = vrot.lane.b32.xlu1 %v466_v58, %s1846_s7  ;;  %v436_v58 = vld [vmem:[%s2125_s29 + $0xd8] sm:$0xff] }
 0x2fd   : > { %940 = vrot.lane.b32.xlu0 %v418_v60, %s1844_s22  ;;  %v451_v60 = vld [vmem:[%s2136_s6 + $0x50] sm:$0xff] }
 0x300   : > { %974 = vrot.lane.b32.xlu1 %v435_v4, %s1844_s22  ;;  %v2311_v4 = vpop.permute.xlu0 %1054 }
 0x301   : > { %1068 = vrot.lane.b32.xlu0 %v450_v9, %s1846_s7  ;;  %v468_v9 = vld [vmem:[%s2136_s6 + $0xd8] sm:$0xff] }
 0x304   : > { %1102 = vrot.lane.b32.xlu1 %v467_v29, %s1846_s7  ;;  %v2317_v34 = vpop.xlane.xlu0 %822  ;;  %v2322_v29 = vpop.permute.xlu1 %1086 }
 0x305   : > { %942 = vrot.lane.b32.xlu0 %v419_v49, %s1844_s22  ;;  %2889 = vst [vmem:[#allocation22_spill] sm:$0xff] %v2317_v34  ;;  %v437_v49 = vld [vmem:[%s2125_s29 + $0xe0] sm:$0xff] }
 0x308   : > { %976 = vrot.lane.b32.xlu1 %v436_v58, %s1844_s22  ;;  %v469_v58 = vld [vmem:[%s2136_s6 + $0xe0] sm:$0xff]  ;;  %v2330_v20 = vpop.permute.xlu0 %928 }
 0x309   : > { %1070 = vrot.lane.b32.xlu0 %v451_v60, %s1846_s7  ;;  %v2328_v60 = vpop.xlane.xlu1 %870 }
 0x30a   : > { %2890 = vst [vmem:[#allocation23_spill] sm:$0xff] %v2328_v60 }
 0x30c   : > { %1104 = vrot.lane.b32.xlu1 %v468_v9, %s1846_s7  ;;  %v453_v9 = vld [vmem:[%s2136_s6 + $0x60] sm:$0xff] }
 0x30d   : > { %944 = vrot.lane.b32.xlu0 %v420_v35, %s1844_s22  ;;  %v438_v35 = vld [vmem:[%s2125_s29 + $0xe8] sm:$0xff]  ;;  %v2337_v10 = vpop.permute.xlu1 %960 }
 0x310   : > { %978 = vrot.lane.b32.xlu1 %v437_v49, %s1844_s22  ;;  %v2339_v49 = vpop.permute.xlu0 %1056 }
 0x311   : > { %1072 = vrot.lane.b32.xlu0 %v452_v21, %s1846_s7  ;;  %v470_v21 = vld [vmem:[%s2136_s6 + $0xe8] sm:$0xff] }
 0x314   : > { %1106 = vrot.lane.b32.xlu1 %v469_v58, %s1846_s7  ;;  %v2345_v0 = vpop.xlane.xlu0 %825  ;;  %v2350_v58 = vpop.permute.xlu1 %1088 }
 0x315   : > { %946 = vrot.lane.b32.xlu0 %v421_v11, %s1844_s22  ;;  %2891 = vst [vmem:[#allocation24_spill] sm:$0xff] %v2345_v0  ;;  %v439_v11 = vld [vmem:[%s2125_s29 + $0xf0] sm:$0xff] }
 0x316   : > { %v423_v0 = vld [vmem:[%s2125_s29 + $0x70] sm:$0xff] }
 0x318   : > { %980 = vrot.lane.b32.xlu1 %v438_v35, %s1844_s22  ;;  %v471_v35 = vld [vmem:[%s2136_s6 + $0xf0] sm:$0xff]  ;;  %v931_v52 = vpop.permute.xlu0 %930 }
 0x319   : > { %1074 = vrot.lane.b32.xlu0 %v453_v9, %s1846_s7  ;;  %v2356_v9 = vpop.xlane.xlu1 %873 }
 0x31a   : > { %2892 = vst [vmem:[#allocation25_spill] sm:$0xff] %v2356_v9 }
 0x31c   : > { %1108 = vrot.lane.b32.xlu1 %v470_v21, %s1846_s7  ;;  %v455_v21 = vld [vmem:[%s2136_s6 + $0x70] sm:$0xff]  ;;  %v1059_v60 = vpop.permute.xlu0 %1058 }
 0x31d   : > { %948 = vrot.lane.b32.xlu0 %v422_v1, %s1844_s22  ;;  %v440_v1 = vld [vmem:[%s2125_s29 + $0xf8] sm:$0xff]  ;;  %v2363_v34 = vpop.permute.xlu1 %962 }
 0x320   : > { %982 = vrot.lane.b32.xlu1 %v439_v11, %s1844_s22  ;;  %v424_v11 = vld [vmem:[%s2125_s29 + $0x78] sm:$0xff]  ;;  %v2369_v43 = vpop.xlane.xlu0 %828 }
 0x321   : > { %1076 = vrot.lane.b32.xlu0 %v454_v53, %s1846_s7  ;;  %v472_v53 = vld [vmem:[%s2136_s6 + $0xf8] sm:$0xff]  ;;  %2893 = vst [vmem:[#allocation26_spill] sm:$0xff] %v2369_v43 }
 0x324   : > { %1110 = vrot.lane.b32.xlu1 %v471_v35, %s1846_s7  ;;  %v2373_v35 = vpop.permute.xlu1 %1090  ;;  %v933_v42 = vpop.permute.xlu0 %932 }
 0x325   : > { %950 = vrot.lane.b32.xlu0 %v423_v0, %s1844_s22  ;;  %v456_v0 = vld [vmem:[%s2136_s6 + $0x78] sm:$0xff] }
 0x328   : > { %984 = vrot.lane.b32.xlu1 %v440_v1, %s1844_s22  ;;  %v2377_v9 = vpop.xlane.xlu1 %876  ;;  %v1061_v1 = vpop.permute.xlu0 %1060 }
 0x329   : > { %1078 = vrot.lane.b32.xlu0 %v455_v21, %s1846_s7  ;;  %2894 = vst [vmem:[#allocation27_spill] sm:$0xff] %v2377_v9 }
 0x32c   : > { %1112 = vrot.lane.b32.xlu1 %v472_v53, %s1846_s7  ;;  %v2379_v36 = vpop.permute.xlu1 %964  ;;  %v2381_v21 = vpop.xlane.xlu0 %831 }
 0x32d   : > { %952 = vrot.lane.b32.xlu0 %v424_v11, %s1844_s22  ;;  %2895 = vst [vmem:[#allocation28_spill] sm:$0xff] %v2381_v21 }
 0x330   : > { %v2383_v45 = vpop.permute.xlu1 %1092  ;;  %v935_v53 = vpop.permute.xlu0 %934 }
 0x331   : > { %1080 = vrot.lane.b32.xlu0 %v456_v0, %s1846_s7  ;;  %v1147_v0 = vsel %vm1146_vm1, %v1964_v32, %v2235_v3  ;;  %v1163_v32 = vsel %vm1146_vm1, %v1972_v38, %v2229_v59  ;;  %v1149_v3 = vsel %vm1146_vm1, %v1984_v47, %v2302_v51  ;;  %v1164_v38 = vsel %vm1146_vm1, %v1975_v39, %v2282_v56 }
 0x332   : > { %v1180_v21 = vsel %vm1179_vm2, %v1147_v0, %v2244_v12  ;;  %v1197_v59 = vsel %vm1179_vm2, %v1164_v38, %v2294_v5  ;;  %v1165_v39 = vsel %vm1146_vm1, %v1981_v46, %v2309_v48  ;;  %v1166_v46 = vsel %vm1146_vm1, %v1991_v54, %v2337_v10 }
 0x333   : > { %v1213_v40 = vsel %vm1212_vm3, %v1180_v21, %v2231_v61  ;;  %v1196_v61 = vsel %vm1179_vm2, %v1163_v32, %v2249_v16  ;;  %v1230_v56 = vsel %vm1212_vm3, %v1197_v59, %v2246_v13  ;;  %v1199_v5 = vsel %vm1179_vm2, %v1166_v46, %v2350_v58  ;;  %v2897_v58 = vld [vmem:[#allocation2_spill] sm:$0xff]  ;;  %v2899_v21 = vld [vmem:[#allocation20_spill] sm:$0xff] }
 0x334   : > { %v2385_v43 = vpop.xlane.xlu1 %879  ;;  %v1063_v30 = vpop.permute.xlu0 %1062  ;;  %v1229_v47 = vsel %vm1212_vm3, %v1196_v61, %v2253_v18  ;;  %v1167_v54 = vsel %vm1146_vm1, %v2001_v62, %v2363_v34  ;;  %v1232_v10 = vsel %vm1212_vm3, %v1199_v5, %v2257_v24  ;;  %v1168_v62 = vsel %vm1146_vm1, %v2011_v6, %v2379_v36 }
 0x335   : > { %2896 = vst [vmem:[#allocation29_spill] sm:$0xff] %v2385_v43  ;;  %v1148_v43 = vsel %vm1146_vm1, %v1967_v33, %v2279_v50  ;;  %v1201_v24 = vsel %vm1179_vm2, %v1168_v62, %v2383_v45 }
 0x336   : > { %v1181_v22 = vsel %vm1179_vm2, %v1148_v43, %v2284_v57  ;;  %v1182_v43 = vsel %vm1179_vm2, %v1149_v3, %v2311_v4  ;;  %v1198_v57 = vsel %vm1179_vm2, %v1165_v39, %v2322_v29 }
 0x337   : > { %v1214_v50 = vsel %vm1212_vm3, %v1181_v22, %v2239_v8  ;;  %v1150_v22 = vsel %vm1146_vm1, %v1994_v55, %v2330_v20  ;;  %v1215_v8 = vsel %vm1212_vm3, %v1182_v43, %v2255_v19  ;;  %v1151_v55 = vsel %vm1146_vm1, %v2004_v63, %v931_v52 }
 0x338   : > { %v2387_v11 = vpop.permute.xlu1 %966  ;;  %v2392_v9 = vpop.xlane.xlu0 %834  ;;  %v1183_v16 = vsel %vm1179_vm2, %v1150_v22, %v2339_v49  ;;  %v1184_v19 = vsel %vm1179_vm2, %v1151_v55, %v1059_v60  ;;  %v1231_v13 = vsel %vm1212_vm3, %v1198_v57, %v2251_v17  ;;  %v1152_v63 = vsel %vm1146_vm1, %v2014_v7, %v933_v42  ;;  %v2904_v22 = vld [vmem:[#allocation5_spill] sm:$0xff]  ;;  %v2906_v55 = vld [vmem:[#allocation22_spill] sm:$0xff] }
 0x339   : > { %v1216_v20 = vsel %vm1212_vm3, %v1183_v16, %v2259_v25  ;;  %v1217_v25 = vsel %vm1212_vm3, %v1184_v19, %v2263_v27  ;;  %v1185_v51 = vsel %vm1179_vm2, %v1152_v63, %v1061_v1  ;;  %v1200_v17 = vsel %vm1179_vm2, %v1167_v54, %v2373_v35  ;;  %v2898_v35 = vld [vmem:[#allocation18_spill] sm:$0xff]  ;;  %v2908_v63 = vld [vmem:[#allocation7_spill] sm:$0xff] }
 0x33a   : > { %v1153_v7 = vsel %vm1146_vm1, %v2024_v15, %v935_v53  ;;  %v1218_v4 = vsel %vm1212_vm3, %v1185_v51, %v2269_v37  ;;  %v1233_v34 = vsel %vm1212_vm3, %v1200_v17, %v2261_v26  ;;  %v1169_v6 = vsel %vm1146_vm1, %v2021_v14, %v2387_v11  ;;  %v2901_v11 = vld [vmem:[#allocation19_spill] sm:$0xff]  ;;  %v2909_v17 = vld [vmem:[#allocation25_spill] sm:$0xff] }
 0x33b   : > { %v1186_v29 = vsel %vm1179_vm2, %v1153_v7, %v1063_v30  ;;  %v1234_v26 = vsel %vm1212_vm3, %v1201_v24, %v2265_v28 }
 0x33c   : > { %v2399_v2 = vpop.permute.xlu1 %1094  ;;  %v937_v33 = vpop.permute.xlu0 %936  ;;  %v1219_v37 = vsel %vm1212_vm3, %v1186_v29, %v2273_v41 }
 0x33d   : > { %v1154_v15 = vsel %vm1146_vm1, %v2034_v23, %v937_v33  ;;  %v1202_v45 = vsel %vm1179_vm2, %v1169_v6, %v2399_v2 }
 0x33e   : > { %v1235_v1 = vsel %vm1212_vm3, %v1202_v45, %v2898_v35 }
 0x340   : > { %v2411_v12 = vpop.xlane.xlu1 %882 }
 0x344   : > { %v969_v18 = vpop.permute.xlu1 %968 }
 0x345   : > { %v1170_v14 = vsel %vm1146_vm1, %v2897_v58, %v969_v18 }
 0x348   : > { %v1097_v52 = vpop.permute.xlu1 %1096 }
 0x349   : > { %v1203_v28 = vsel %vm1179_vm2, %v1170_v14, %v1097_v52  ;;  %v2915_v14 = vld [vmem:[#allocation10_spill] sm:$0xff] }
 0x34a   : > { %v1236_v0 = vsel %vm1212_vm3, %v1203_v28, %v2901_v11 }
 0x34c   : > { %v2468_v42 = vpop.xlane.xlu1 %885 }
 0x34f   : > { %1245 = vxpose.xlu0.b32.start [1/16] (narrow) %v1213_v40, 16  ;;  %v1065_v40 = vpop.permute.xlu0 %1064 }
 0x350   : > { %v1187_v30 = vsel %vm1179_vm2, %v1154_v15, %v1065_v40  ;;  %v971_v36 = vpop.permute.xlu1 %970  ;;  %v2912_v15 = vld [vmem:[#allocation9_spill] sm:$0xff] }
 0x351   : > { %v1220_v41 = vsel %vm1212_vm3, %v1187_v30, %v2275_v44 }
 0x353   : > { %1246 = vxpose.xlu0.b32.cont [2/16] (narrow) %v1214_v50, 16  ;;  %v2448_v48 = vpop.xlane.xlu0 %837  ;;  %v2902_v50 = vld [vmem:[#allocation21_spill] sm:$0xff] }
 0x354   : > { %v1099_v2 = vpop.permute.xlu1 %1098 }
 0x355   : > { %1277 = vxpose.xlu1.b32.start [1/16] (narrow) %v1229_v47, 16  ;;  %v2903_v47 = vld [vmem:[#allocation4_spill] sm:$0xff] }
 0x357   : > { %1247 = vxpose.xlu0.b32.cont [3/16] (narrow) %v1215_v8, 16  ;;  %v939_v27 = vpop.permute.xlu0 %938 }
 0x358   : > { %v1155_v23 = vsel %vm1146_vm1, %v2044_v31, %v939_v27  ;;  %v2900_v31 = vld [vmem:[#allocation3_spill] sm:$0xff]  ;;  %v2910_v27 = vld [vmem:[#allocation24_spill] sm:$0xff] }
 0x359   : > { %1278 = vxpose.xlu1.b32.cont [2/16] (narrow) %v1230_v56, 16  ;;  %v1171_v44 = vsel %vm1146_vm1, %v2900_v31, %v971_v36  ;;  %v2905_v56 = vld [vmem:[#allocation23_spill] sm:$0xff] }
 0x35a   : > { %v1204_v32 = vsel %vm1179_vm2, %v1171_v44, %v1099_v2  ;;  %v2917_v44 = vld [vmem:[#allocation29_spill] sm:$0xff] }
 0x35b   : > { %1248 = vxpose.xlu0.b32.cont [4/16] (narrow) %v1216_v20, 16  ;;  %v1067_v60 = vpop.permute.xlu0 %1066  ;;  %v1237_v61 = vsel %vm1212_vm3, %v1204_v32, %v2902_v50 }
 0x35c   : > { %v1188_v49 = vsel %vm1179_vm2, %v1155_v23, %v1067_v60  ;;  %v2914_v23 = vld [vmem:[#allocation26_spill] sm:$0xff] }
 0x35d   : > { %1279 = vxpose.xlu1.b32.cont [3/16] (narrow) %v1231_v13, 16  ;;  %v1221_v53 = vsel %vm1212_vm3, %v1188_v49, %v2899_v21  ;;  %v2907_v13 = vld [vmem:[#allocation6_spill] sm:$0xff] }
 0x35f   : > { %1249 = vxpose.xlu0.b32.cont [5/16] (narrow) %v1217_v25, 16 }
 0x361   : > { %1280 = vxpose.xlu1.b32.cont [4/16] (narrow) %v1232_v10, 16 }
 0x363   : > { %1250 = vxpose.xlu0.b32.cont [6/16] (narrow) %v1218_v4, 16 }
 0x365   : > { %1281 = vxpose.xlu1.b32.cont [5/16] (narrow) %v1233_v34, 16  ;;  %v2911_v34 = vld [vmem:[#allocation8_spill] sm:$0xff] }
 0x367   : > { %1251 = vxpose.xlu0.b32.cont [7/16] (narrow) %v1219_v37, 16 }
 0x369   : > { %1282 = vxpose.xlu1.b32.cont [6/16] (narrow) %v1234_v26, 16  ;;  %v2913_v26 = vld [vmem:[#allocation27_spill] sm:$0xff] }
 0x36b   : > { %1252 = vxpose.xlu0.b32.cont [8/16] (narrow) %v1220_v41, 16 }
 0x36d   : > { %1283 = vxpose.xlu1.b32.cont [7/16] (narrow) %v1235_v1, 16  ;;  %v2916_v1 = vld [vmem:[#allocation11_spill] sm:$0xff] }
 0x36f   : > { %1253 = vxpose.xlu0.b32.cont [9/16] (narrow) %v1221_v53, 16 }
 0x371   : > { %1284 = vxpose.xlu1.b32.cont [8/16] (narrow) %v1236_v0, 16  ;;  %v2918_v0 = vld [vmem:[#allocation28_spill] sm:$0xff] }
 0x374   : > { %v2509_v3 = vpop.xlane.xlu1 %888  ;;  %v2511_v33 = vpop.xlane.xlu0 %840 }
 0x375   : > { %1285 = vxpose.xlu1.b32.cont [9/16] (narrow) %v1237_v61, 16 }
 0x378   : > { %v973_v43 = vpop.permute.xlu1 %972  ;;  %v941_v38 = vpop.permute.xlu0 %940 }
 0x379   : > { %v1172_v59 = vsel %vm1146_vm1, %v2903_v47, %v973_v43  ;;  %v1156_v8 = vsel %vm1146_vm1, %v2904_v22, %v941_v38  ;;  %v2919_v43 = vld [vmem:[#allocation12_spill] sm:$0xff]  ;;  %v2920_v47 = vld [vmem:[#allocation13_spill] sm:$0xff] }
 0x37c   : > { %v1101_v16 = vpop.permute.xlu1 %1100  ;;  %v1069_v39 = vpop.permute.xlu0 %1068 }
 0x37d   : > { %v1205_v18 = vsel %vm1179_vm2, %v1172_v59, %v1101_v16  ;;  %v1189_v40 = vsel %vm1179_vm2, %v1156_v8, %v1069_v39 }
 0x37e   : > { %v1238_v57 = vsel %vm1212_vm3, %v1205_v18, %v2905_v56  ;;  %v1222_v20 = vsel %vm1212_vm3, %v1189_v40, %v2906_v55  ;;  %v2921_v55 = vld [vmem:[#allocation14_spill] sm:$0xff] }
 0x37f   : > { %1286 = vxpose.xlu1.b32.cont [10/16] (narrow) %v1238_v57, 16  ;;  %1254 = vxpose.xlu0.b32.cont [10/16] (narrow) %v1222_v20, 16 }
 0x380   : > { %v975_v19 = vpop.permute.xlu1 %974  ;;  %v943_v46 = vpop.permute.xlu0 %942 }
 0x381   : > { %v1173_v5 = vsel %vm1146_vm1, %v2907_v13, %v975_v19  ;;  %v1157_v52 = vsel %vm1146_vm1, %v2908_v63, %v943_v46  ;;  %v2922_v19 = vld [vmem:[#allocation15_spill] sm:$0xff] }
 0x384   : > { %v1103_v25 = vpop.permute.xlu1 %1102  ;;  %v1071_v51 = vpop.permute.xlu0 %1070 }
 0x385   : > { %v1206_v54 = vsel %vm1179_vm2, %v1173_v5, %v1103_v25  ;;  %v1190_v10 = vsel %vm1179_vm2, %v1157_v52, %v1071_v51 }
 0x386   : > { %v1239_v7 = vsel %vm1212_vm3, %v1206_v54, %v2909_v17  ;;  %v1223_v4 = vsel %vm1212_vm3, %v1190_v10, %v2910_v27  ;;  %v2923_v54 = vld [vmem:[#allocation16_spill] sm:$0xff]  ;;  %v2924_v17 = vld [vmem:[#allocation17_spill] sm:$0xff] }
 0x387   : > { %1287 = vxpose.xlu1.b32.cont [11/16] (narrow) %v1239_v7, 16  ;;  %1255 = vxpose.xlu0.b32.cont [11/16] (narrow) %v1223_v4, 16 }
 0x388   : > { %v977_v29 = vpop.permute.xlu1 %976  ;;  %v945_v62 = vpop.permute.xlu0 %944 }
 0x389   : > { %v1174_v24 = vsel %vm1146_vm1, %v2911_v34, %v977_v29  ;;  %v1158_v37 = vsel %vm1146_vm1, %v2912_v15, %v945_v62 }
 0x38c   : > { %v1105_v30 = vpop.permute.xlu1 %1104  ;;  %v1073_v6 = vpop.permute.xlu0 %1072 }
 0x38d   : > { %v1207_v36 = vsel %vm1179_vm2, %v1174_v24, %v1105_v30  ;;  %v1191_v60 = vsel %vm1179_vm2, %v1158_v37, %v1073_v6 }
 0x38e   : > { %v1240_v45 = vsel %vm1212_vm3, %v1207_v36, %v2913_v26  ;;  %v1224_v41 = vsel %vm1212_vm3, %v1191_v60, %v2914_v23 }
 0x38f   : > { %1288 = vxpose.xlu1.b32.cont [12/16] (narrow) %v1240_v45, 16  ;;  %1256 = vxpose.xlu0.b32.cont [12/16] (narrow) %v1224_v41, 16 }
 0x390   : > { %v979_v49 = vpop.permute.xlu1 %978  ;;  %v947_v58 = vpop.permute.xlu0 %946 }
 0x391   : > { %v1175_v35 = vsel %vm1146_vm1, %v2915_v14, %v979_v49  ;;  %v1159_v28 = vsel %vm1146_vm1, %v2916_v1, %v947_v58 }
 0x394   : > { %v1107_v2 = vpop.permute.xlu1 %1106  ;;  %v1075_v21 = vpop.permute.xlu0 %1074 }
 0x395   : > { %v1208_v53 = vsel %vm1179_vm2, %v1175_v35, %v1107_v2  ;;  %v1192_v31 = vsel %vm1179_vm2, %v1159_v28, %v1075_v21 }
 0x396   : > { %v1241_v11 = vsel %vm1212_vm3, %v1208_v53, %v2917_v44  ;;  %v1225_v32 = vsel %vm1212_vm3, %v1192_v31, %v2918_v0 }
 0x397   : > { %1289 = vxpose.xlu1.b32.cont [13/16] (narrow) %v1241_v11, 16  ;;  %1257 = vxpose.xlu0.b32.cont [13/16] (narrow) %v1225_v32, 16 }
 0x398   : > { %v981_v50 = vpop.permute.xlu1 %980  ;;  %v949_v61 = vpop.permute.xlu0 %948 }
 0x399   : > { %v1176_v38 = vsel %vm1146_vm1, %v2919_v43, %v981_v50  ;;  %v1160_v59 = vsel %vm1146_vm1, %v2920_v47, %v949_v61 }
 0x39c   : > { %v1109_v22 = vpop.permute.xlu1 %1108  ;;  %v1077_v8 = vpop.permute.xlu0 %1076 }
 0x39d   : > { %v1209_v16 = vsel %vm1179_vm2, %v1176_v38, %v1109_v22  ;;  %v1193_v39 = vsel %vm1179_vm2, %v1160_v59, %v1077_v8 }
 0x39e   : > { %v1242_v18 = vsel %vm1212_vm3, %v1209_v16, %v2411_v12  ;;  %v1226_v40 = vsel %vm1212_vm3, %v1193_v39, %v2392_v9 }
 0x39f   : > { %1290 = vxpose.xlu1.b32.cont [14/16] (narrow) %v1242_v18, 16  ;;  %1258 = vxpose.xlu0.b32.cont [14/16] (narrow) %v1226_v40, 16 }
 0x3a0   : > { %v983_v56 = vpop.permute.xlu1 %982  ;;  %v951_v57 = vpop.permute.xlu0 %950 }
 0x3a1   : > { %v1177_v20 = vsel %vm1146_vm1, %v2921_v55, %v983_v56  ;;  %v1161_v46 = vsel %vm1146_vm1, %v2922_v19, %v951_v57 }
 0x3a4   : > { %v1111_v13 = vpop.permute.xlu1 %1110  ;;  %v1079_v5 = vpop.permute.xlu0 %1078 }
 0x3a5   : > { %v1210_v63 = vsel %vm1179_vm2, %v1177_v20, %v1111_v13  ;;  %v1194_v52 = vsel %vm1179_vm2, %v1161_v46, %v1079_v5 }
 0x3a6   : > { %v1243_v12 = vsel %vm1212_vm3, %v1210_v63, %v2468_v42  ;;  %v1227_v9 = vsel %vm1212_vm3, %v1194_v52, %v2448_v48 }
 0x3a7   : > { %1291 = vxpose.xlu1.b32.cont [15/16] (narrow) %v1243_v12, 16  ;;  %1259 = vxpose.xlu0.b32.cont [15/16] (narrow) %v1227_v9, 16 }
 0x3a8   : > { %v985_v25 = vpop.permute.xlu1 %984  ;;  %v953_v51 = vpop.permute.xlu0 %952 }
 0x3a9   : > { %v1178_v10 = vsel %vm1146_vm1, %v2923_v54, %v985_v25  ;;  %v1162_v7 = vsel %vm1146_vm1, %v2924_v17, %v953_v51 }
 0x3ac   : > { %v1113_v27 = vpop.permute.xlu1 %1112  ;;  %v1081_v4 = vpop.permute.xlu0 %1080 }
 0x3ad   : > { %v1211_v29 = vsel %vm1179_vm2, %v1178_v10, %v1113_v27  ;;  %v1195_v62 = vsel %vm1179_vm2, %v1162_v7, %v1081_v4 }
 0x3ae   : > { %v1244_v42 = vsel %vm1212_vm3, %v1211_v29, %v2509_v3  ;;  %v1228_v48 = vsel %vm1212_vm3, %v1195_v62, %v2511_v33  ;;  %vm1847_vm3 = vmmov 1  }
 0x3af   : > { %1292 = vxpose.xlu1.b32.end [16/16] (narrow) %v1244_v42, 16  ;;  %1260 = vxpose.xlu0.b32.end [16/16] (narrow) %v1228_v48, 16 }
 0x3f3   : > { %v2585_v34 = vpop.trf.xlu1  ;;  %v2587_v24 = vpop.trf.xlu0 }
 0x3f4   : > { %v1349_v15 = vmul.f32 0.5, %v2587_v24  ;;  %v1350_v37 = vmul.f32 0.5, %v2585_v34  ;;  %v1347_v23 = vmul.f32 0.071428575, %v2587_v24  ;;  %v1348_v41 = vmul.f32 0.071428575, %v2585_v34 }
 0x3f5   : > { %v1391_v2 = vrot.slane %v2587_v24, 1  ;;  %v1392_v21 = vrot.slane %v2585_v34, 1 }
 0x3f6   : > { %v1353_v36 = vrot.slane %v1349_v15, 2  ;;  %v1354_v60 = vrot.slane %v1350_v37, 2 }
 0x3f7   : > { %v2591_v30 = vpop.trf.xlu1  ;;  %v2593_v6 = vpop.trf.xlu0  ;;  %v1395_v42 = vmul.f32 %v1391_v2, %v2587_v24  ;;  %v1396_v48 = vmul.f32 %v1392_v21, %v2585_v34 }
 0x3f8   : > { %v1328_v3 = vmul.f32 0.5, %v2591_v30  ;;  %v1327_v33 = vmul.f32 0.5, %v2593_v6  ;;  %v2598_v26 = vrot.slane %v2593_v6, 1  ;;  %v2601_v45 = vrot.slane %v2591_v30, 1 }
 0x3f9   : > { %v1326_v49 = vmul.f32 0.071428575, %v2591_v30  ;;  %v1325_v14 = vmul.f32 0.071428575, %v2593_v6  ;;  %v1357_v1 = vadd.f32 %v1353_v36, %v1347_v23  ;;  %v1358_v28 = vadd.f32 %v1354_v60, %v1348_v41 }
 0x3fa   : > { %v1332_v58 = vrot.slane %v1328_v3, 2  ;;  %v1331_v35 = vrot.slane %v1327_v33, 2  ;;  %v2611_v0 = vmul.f32 %v2598_v26, %v2593_v6  ;;  %v2615_v32 = vmul.f32 %v2601_v45, %v2591_v30 }
 0x3fb   : > { %v1367_v50 = vsub.f32 %v1347_v23, %v1353_v36  ;;  %v1368_v61 = vsub.f32 %v1348_v41, %v1354_v60  ;;  %vm1317_vm7 = vcmp.gt.f32.partialorder %v2593_v6, 0.0  ;;  %vm1318_vm8 = vcmp.gt.f32.partialorder %v2591_v30, 0.0 }
 0x3fc   : > { %v1335_v53 = vsub.f32 %v1325_v14, %v1331_v35  ;;  %v1336_v31 = vsub.f32 %v1326_v49, %v1332_v58  ;;  %v1337_v44 = vadd.f32 %v1331_v35, %v1325_v14  ;;  %v1338_v11 = vadd.f32 %v1332_v58, %v1326_v49 }
 0x3fd   : > { %v1439_v16 = vadd.f32 %v1347_v23, %v1331_v35  ;;  %v1440_v39 = vadd.f32 %v1348_v41, %v1332_v58  ;;  %v1443_v25 = vsub.f32 %v1347_v23, %v1331_v35  ;;  %v1444_v51 = vsub.f32 %v1348_v41, %v1332_v58 }
 0x3fe   : > { %v1361_v43 = vrot.slane %v1337_v44, 2  ;;  %v1362_v38 = vrot.slane %v1338_v11, 2  ;;  %v1371_v47 = vrot.slane %v1335_v53, 2  ;;  %v1372_v59 = vrot.slane %v1336_v31, 2 }
 0x3ff   : > { %v1423_v22 = vrot.slane %v1337_v44, 5  ;;  %v1424_v8 = vrot.slane %v1338_v11, 5  ;;  %v1429_v19 = vrot.slane %v1335_v53, 5  ;;  %v1430_v46 = vrot.slane %v1336_v31, 5 }
 0x400   : > { %v1365_v18 = vmin.f32 %v1357_v1, %v1361_v43  ;;  %v1366_v40 = vmin.f32 %v1358_v28, %v1362_v38  ;;  %v1375_v56 = vmax.f32 %v1367_v50, %v1371_v47  ;;  %v1376_v57 = vmax.f32 %v1368_v61, %v1372_v59 }
 0x401   : > { %v1427_v55 = vmin.f32 %v1357_v1, %v1423_v22  ;;  %v1428_v20 = vmin.f32 %v1358_v28, %v1424_v8  ;;  %v1441_v63 = vmin.f32 %v1439_v16, %v1423_v22  ;;  %v1442_v52 = vmin.f32 %v1440_v39, %v1424_v8 }
 0x402   : > { %v1377_v13 = vsub.f32 %v1365_v18, %v1375_v56  ;;  %v1378_v5 = vsub.f32 %v1366_v40, %v1376_v57  ;;  %v1433_v12 = vmax.f32 %v1367_v50, %v1429_v19  ;;  %v1434_v9 = vmax.f32 %v1368_v61, %v1430_v46 }
 0x403   : > { %v1399_v17 = vrot.slane %v2611_v0, 2  ;;  %v1400_v7 = vrot.slane %v2615_v32, 2  ;;  %v1445_v27 = vmax.f32 %v1443_v25, %v1429_v19  ;;  %v1446_v4 = vmax.f32 %v1444_v51, %v1430_v46 }
 0x404   : > { %v1379_v54 = vmax.f32 %v1377_v13, 0.0  ;;  %v1380_v10 = vmax.f32 %v1378_v5, 0.0  ;;  %v1435_v15 = vsub.f32 %v1427_v55, %v1433_v12  ;;  %v1436_v37 = vsub.f32 %v1428_v20, %v1434_v9 }
 0x405   : > { %v1447_v36 = vsub.f32 %v1441_v63, %v1445_v27  ;;  %v1448_v60 = vsub.f32 %v1442_v52, %v1446_v4  ;;  %v1403_v23 = vadd.f32 %v1399_v17, %v1395_v42  ;;  %v1404_v41 = vadd.f32 %v1400_v7, %v1396_v48 }
 0x406   : > { %v1383_v29 = vrot.slane %v1379_v54, 1  ;;  %v1384_v62 = vrot.slane %v1380_v10, 1  ;;  %v1461_v1 = vrot.slane %v2611_v0, 5  ;;  %v1462_v28 = vrot.slane %v2615_v32, 5 }
 0x407   : > { %v1449_v49 = vmax.f32 %v1447_v36, 0.0  ;;  %v1450_v58 = vmax.f32 %v1448_v60, 0.0  ;;  %v1437_v53 = vmax.f32 %v1435_v15, 0.0  ;;  %v1438_v31 = vmax.f32 %v1436_v37, 0.0 }
 0x408   : > { %v1387_v3 = vmul.f32 %v1383_v29, %v1379_v54  ;;  %v1388_v33 = vmul.f32 %v1384_v62, %v1380_v10  ;;  %v1459_v43 = vmul.f32 %v2598_v26, %v2587_v24  ;;  %v1460_v59 = vmul.f32 %v2601_v45, %v2585_v34 }
 0x409   : > { %v1453_v44 = vrot.slane %v1449_v49, 1  ;;  %v1454_v11 = vrot.slane %v1450_v58, 1  ;;  %v1309_v25 = vlaneseq  ;;  %v1507_v54 = vrot.slane %v2587_v24, 2 }
 0x40a   : > { %v1407_v14 = vrot.slane %v1387_v3, 6  ;;  %v1408_v35 = vrot.slane %v1388_v33, 6  ;;  %v1465_v22 = vadd.f32 %v1461_v1, %v1459_v43  ;;  %v1466_v16 = vadd.f32 %v1462_v28, %v1460_v59 }
 0x40b   : > { %v1457_v38 = vmul.f32 %v1453_v44, %v1437_v53  ;;  %v1458_v47 = vmul.f32 %v1454_v11, %v1438_v31  ;;  %v1511_v10 = vrot.slane %v2587_v24, 7  ;;  %v1508_v7 = vrot.slane %v2585_v34, 2 }
 0x40c   : > { %v1411_v50 = vsub.f32 %v1403_v23, %v1407_v14  ;;  %v1412_v61 = vsub.f32 %v1404_v41, %v1408_v35  ;;  %v1512_v27 = vrot.slane %v2585_v34, 7  ;;  %v2660_v4 = vadd.f32 1e-16, %v2593_v6 }
 0x40d   : > { %v1469_v0 = vrot.slane %v1457_v38, 6  ;;  %v1470_v39 = vrot.slane %v1458_v47, 6  ;;  %v1517_v62 = vrot.slane %v2587_v24, 3  ;;  %v1518_v42 = vrot.slane %v2585_v34, 3 }
 0x40e   : > { %v1415_v8 = vrot.slane %v1411_v50, 2  ;;  %v1416_v32 = vrot.slane %v1412_v61, 2  ;;  %v2668_v48 = vadd.f32 1e-16, %v2591_v30  ;;  %v1310_v37 = vand.u32 127, %v1309_v25 }
 0x40f   : > { %v1473_v18 = vsub.f32 %v1465_v22, %v1469_v0  ;;  %v1474_v40 = vsub.f32 %v1466_v16, %v1470_v39  ;;  %v1555_v41 = vrot.slane %v2660_v4, 4  ;;  %v1613_v58 = vmul.f32 %v2593_v6, %v2593_v6 }
 0x410   : > { %1820 = vrcp.f32 %v1415_v8  ;;  %v1556_v49 = vrot.slane %v2668_v48, 4  ;;  %v1311_v28 = vadd.s32 128, %v1310_v37  ;;  %v1495_v31 = vrot.slane %v2587_v24, 5 }
 0x411   : > { %v1477_v56 = vrot.slane %v1473_v18, 2  ;;  %v1478_v57 = vrot.slane %v1474_v40, 2  ;;  %1822 = vrcp.f32 %v1416_v32  ;;  %v1496_v11 = vrot.slane %v2585_v34, 5 }
 0x412   : > { %v1581_v50 = vrot.slane %v2660_v4, 5  ;;  %v1582_v61 = vrot.slane %v2668_v48, 5  ;;  %v1501_v43 = vrot.slane %v2587_v24, 6  ;;  %v1502_v59 = vrot.slane %v2585_v34, 6 }
 0x413   : > { %1824 = vrcp.f32 %v1477_v56  ;;  %v1529_v22 = vrot.slane %v2593_v6, 2  ;;  %v1530_v39 = vrot.slane %v2591_v30, 2  ;;  %v1537_v32 = vrot.slane %v2593_v6, 3 }
 0x414   : > { %1826 = vrcp.f32 %v1478_v57  ;;  %v1611_v18 = vmul.f32 %v2587_v24, %v2587_v24 }
 0x41a   : > { %v1821_v55 = vpop.eup %1820 }
 0x41b   : > { %v1823_v20 = vpop.eup %1822  ;;  %v2635_v63 = vmul.f32 %v1821_v55, %v1387_v3  ;;  %v1312_v3 = vstv %s1802_s8  ;;  %v1538_v55 = vrot.slane %v2591_v30, 3 }
 0x41c   : > { %v2638_v12 = vmul.f32 %v1823_v20, %v1388_v33  ;;  %v2690_v53 = vadd.s32 %v1312_v3, %v1310_v37 }
 0x41d   : > { %v1825_v19 = vpop.eup %1824 }
 0x41e   : > { %v1827_v46 = vpop.eup %1826  ;;  %v2631_v13 = vmul.f32 %v1825_v19, %v1457_v38  ;;  %v1614_v38 = vmul.f32 %v2591_v30, %v2591_v30  ;;  %vm1315_vm6 = vcmp.lt.s32.totalorder %v2690_v53, 392 }
 0x41f   : > { %v2633_v5 = vmul.f32 %v1827_v46, %v1458_v47  ;;  %v1617_v47 = vrot.slane %v1613_v58, 5  ;;  %v2741_v46 = vadd.s32 %v1312_v3, %v1311_v28  ;;  %vm2797_vm2 = vmand %vm1317_vm7, %vm1315_vm6 }
 0x420   : > { %v1487_v52 = vrot.slane %v2631_v13, 5  ;;  %v1618_v20 = vrot.slane %v1614_v38, 5 }
 0x421   : > { %v1488_v9 = vrot.slane %v2633_v5, 5  ;;  %v2739_v19 = vadd.f32 %v1617_v47, %v1611_v18  ;;  %vm1316_vm9 = vcmp.lt.s32.totalorder %v2741_v46, 392 }
 0x422   : > { %vm2644_vm4 = vcmp.gt.f32.partialorder %v2635_v63, %v1487_v52 }
 0x423   : > { %vm2653_vm5 = vcmp.gt.f32.partialorder %v2638_v12, %v1488_v9  ;;  %v1515_v29 = vsel %vm2644_vm4, %v1507_v54, %v1511_v10  ;;  %v1521_v36 = vsel %vm2644_vm4, %v1517_v62, %v2593_v6  ;;  %v1499_v0 = vsel %vm2644_vm4, %v2587_v24, %v1495_v31 }
 0x424   : > { %v1516_v15 = vsel %vm2653_vm5, %v1508_v7, %v1512_v27  ;;  %v1522_v60 = vsel %vm2653_vm5, %v1518_v42, %v2591_v30  ;;  %v1547_v33 = vadd.f32 1e-16, %v1515_v29  ;;  %v2684_v14 = vadd.f32 1e-16, %v1521_v36 }
 0x425   : > { %v2678_v23 = vadd.f32 1e-16, %v1516_v15  ;;  %v2686_v35 = vadd.f32 1e-16, %v1522_v60  ;;  %v1500_v40 = vsel %vm2653_vm5, %v2585_v34, %v1496_v11  ;;  %v1505_v56 = vsel %vm2644_vm4, %v1391_v2, %v1501_v43 }
 0x426   : > { %v2688_v1 = vmul.f32 %v1555_v41, %v1547_v33  ;;  %v2711_v8 = vmul.f32 %v1581_v50, %v2684_v14  ;;  %v1506_v57 = vsel %vm2653_vm5, %v1392_v21, %v1502_v59  ;;  %v1533_v25 = vsub.f32 %v1499_v0, %v1529_v22 }
 0x427   : > { %v2696_v44 = vmul.f32 %v1556_v49, %v2678_v23  ;;  %v2716_v16 = vmul.f32 %v1582_v61, %v2686_v35  ;;  %v1534_v54 = vsub.f32 %v1500_v40, %v1530_v39  ;;  %v1541_v10 = vsub.f32 %v1505_v56, %v1537_v32 }
 0x428   : > { %1828 = vrsqrt.f32 %v2688_v1  ;;  %v1542_v2 = vsub.f32 %v1506_v57, %v1538_v55  ;;  %v1612_v7 = vmul.f32 %v2585_v34, %v2585_v34  ;;  %v1523_v21 = vrot.slane %v2587_v24, 4 }
 0x429   : > { %1830 = vrsqrt.f32 %v2696_v44  ;;  %v1524_v27 = vrot.slane %v2585_v34, 4  ;;  %v1493_v29 = vsel %vm2644_vm4, %v2635_v63, %v1487_v52  ;;  %v1625_v42 = vrot.slane %v2739_v19, 6 }
 0x42a   : > { %1832 = vrsqrt.f32 %v2711_v8  ;;  %v2754_v62 = vadd.f32 %v1618_v20, %v1612_v7  ;;  %v1494_v34 = vsel %vm2653_vm5, %v2638_v12, %v1488_v9  ;;  %v1527_v24 = vsel %vm2644_vm4, %v1523_v21, %v2598_v26  ;;  %vm1321_vm4 = vmxor %vm1317_vm7, %vm1847_vm3 }
 0x42b   : > { %1834 = vrsqrt.f32 %v2716_v16  ;;  %v1528_v13 = vsel %vm2653_vm5, %v1524_v27, %v2601_v45  ;;  %v1535_v63 = vmul.f32 %v1533_v25, %v1533_v25  ;;  %v1536_v37 = vmul.f32 %v1534_v54, %v1534_v54  ;;  %vm1322_vm5 = vmxor %vm1318_vm8, %vm1847_vm3 }
 0x42c   : > { %v1543_v36 = vmul.f32 %v1541_v10, %v1541_v10  ;;  %v1544_v60 = vmul.f32 %v1542_v2, %v1542_v2  ;;  %v1559_v3 = vadd.f32 %v1555_v41, %v1547_v33  ;;  %vm1565_vm10 = vcmp.eq.f32.partialorder %v2688_v1, inf  ;;  %vm1323_vm7 = vmand %vm1321_vm4, %vm1315_vm6 }
 0x42d   : > { %v1568_v12 = vand.u32 2147483648, %v2688_v1  ;;  %vm1567_vm11 = vcmp.eq.f32.partialorder %v2688_v1, 0.0  ;;  %vm1572_vm12 = vcmp.eq.f32.partialorder %v2696_v44, inf  ;;  %v1575_v17 = vand.u32 2147483648, %v2696_v44 }
 0x42e   : > { %vm1574_vm13 = vcmp.eq.f32.partialorder %v2696_v44, 0.0  ;;  %v1641_v33 = vsub.f32 %v1527_v24, %v1493_v29  ;;  %v1642_v47 = vsub.f32 %v1528_v13, %v1494_v34  ;;  %vm1591_vm14 = vcmp.eq.f32.partialorder %v2711_v8, inf }
 0x42f   : > { %vm1593_vm15 = vcmp.eq.f32.partialorder %v2711_v8, 0.0  ;;  %vm1598_vm0 = vcmp.eq.f32.partialorder %v2716_v16, inf  ;;  %v1560_v39 = vadd.f32 %v1556_v49, %v2678_v23  ;;  %vm1600_vm1 = vcmp.eq.f32.partialorder %v2716_v16, 0.0 }
 0x430   : > { %v1585_v56 = vadd.f32 %v1581_v50, %v2684_v14  ;;  %v1643_v20 = vmul.f32 %v1641_v33, %v1641_v33  ;;  %v1626_v4 = vrot.slane %v2754_v62, 6  ;;  %v1644_v14 = vmul.f32 %v1642_v47, %v1642_v47 }
 0x431   : > { %v1545_v48 = vadd.f32 %v1543_v36, %v1535_v63  ;;  %v1629_v10 = vsel %vm1323_vm7, %v1625_v42, 0.0  ;;  %v1609_v27 = vsel %vm2797_vm2, %v2598_v26, 0.0  ;;  %vm1677_vm6 = vcmask 1040384  }
 0x432   : > { %v1829_v15 = vpop.eup %1828  ;;  %v1647_v2 = vrot.slane %v1643_v20, 2  ;;  %v1648_v21 = vrot.slane %v1644_v14, 2  ;;  %v1661_v62 = vrot.slane %v1629_v10, 5  ;;  %v1655_v26 = vrot.slane %v1609_v27, 6 }
 0x433   : > { %v1831_v52 = vpop.eup %1830  ;;  %v1564_v5 = vmul.f32 %v1829_v15, %v2688_v1 }
 0x434   : > { %v1571_v9 = vmul.f32 %v1831_v52, %v2696_v44  ;;  %v1833_v58 = vpop.eup %1832  ;;  %v1651_v19 = vsel %vm2797_vm2, %v1647_v2, 0.0  ;;  %v1678_v36 = vsel %vm1677_vm6, %v1655_v26, %v1661_v62 }
 0x435   : > { %v1566_v51 = vsel %vm1565_vm10, %v2688_v1, %v1564_v5  ;;  %v1835_v41 = vpop.eup %1834  ;;  %v1590_v38 = vmul.f32 %v1833_v58, %v2711_v8  ;;  %v1594_v1 = vand.u32 2147483648, %v2711_v8  ;;  %vm2816_vm10 = vmand %vm1318_vm8, %vm1316_vm9  ;;  %vm1680_vm8 = vcmask 1041408  }
 0x436   : > { %v1569_v28 = vsel %vm1567_vm11, %v1568_v12, %v1566_v51  ;;  %v1573_v31 = vsel %vm1572_vm12, %v2696_v44, %v1571_v9  ;;  %v1597_v22 = vmul.f32 %v1835_v41, %v2716_v16  ;;  %v1601_v44 = vand.u32 2147483648, %v2716_v16  ;;  %vm1324_vm11 = vmand %vm1322_vm5, %vm1316_vm9 }
 0x437   : > { %v1576_v11 = vsel %vm1574_vm13, %v1575_v17, %v1573_v31  ;;  %v1577_v43 = vmul.f32 2.0, %v1569_v28  ;;  %v1592_v0 = vsel %vm1591_vm14, %v2711_v8, %v1590_v38  ;;  %v1630_v30 = vsel %vm1324_vm11, %v1626_v4, 0.0 }
 0x438   : > { %v1578_v59 = vmul.f32 2.0, %v1576_v11  ;;  %v1595_v32 = vsel %vm1593_vm15, %v1594_v1, %v1592_v0  ;;  %v1599_v18 = vsel %vm1598_vm0, %v2716_v16, %v1597_v22  ;;  %v1586_v16 = vadd.f32 %v1582_v61, %v2686_v35 }
 0x439   : > { %v1579_v8 = vsub.f32 %v1559_v3, %v1577_v43  ;;  %v1602_v57 = vsel %vm1600_vm1, %v1601_v44, %v1599_v18  ;;  %v1603_v23 = vmul.f32 2.0, %v1595_v32  ;;  %v1546_v61 = vadd.f32 %v1544_v60, %v1536_v37 }
 0x43a   : > { %v1580_v49 = vsub.f32 %v1560_v39, %v1578_v59  ;;  %v1604_v55 = vmul.f32 2.0, %v1602_v57  ;;  %v1610_v29 = vsel %vm2816_vm10, %v2601_v45, 0.0  ;;  %v1662_v42 = vrot.slane %v1630_v30, 5 }
 0x43b   : > { %v1605_v25 = vsub.f32 %v1585_v56, %v1603_v23  ;;  %v1652_v24 = vsel %vm2816_vm10, %v1648_v21, 0.0  ;;  %v1656_v45 = vrot.slane %v1610_v29, 6  ;;  %vm1683_vm9 = vcmask 1042432  }
 0x43c   : > { %v1606_v50 = vsub.f32 %v1586_v16, %v1604_v55  ;;  %v1673_v37 = vrot.slane %v1651_v19, 3  ;;  %vm1686_vm12 = vcmask 1043456   ;;  %v1674_v60 = vrot.slane %v1652_v24, 3 }
 0x43d   : > { %v1607_v35 = vadd.f32 %v1605_v25, %v1579_v8  ;;  %v1679_v5 = vsel %vm1677_vm6, %v1656_v45, %v1662_v42  ;;  %v1848_v31 = vmov 0  }
 0x43e   : > { %v1608_v54 = vadd.f32 %v1606_v50, %v1580_v49  ;;  %1818 = vset.pattern.permute.xlu1 %v1848_v31  ;;  %1819 = vset.pattern.permute.xlu0 %v1848_v31 }
 0x43f   : > { %v1631_v7 = vadd.f32 %v1607_v35, %v1545_v48 }
 0x440   : > { %v1632_v53 = vadd.f32 %v1608_v54, %v1546_v61 }
 0x441   : > { %v1635_v46 = vrot.slane %v1631_v7, 2 }
 0x442   : > { %v1636_v15 = vrot.slane %v1632_v53, 2 }
 0x443   : > { %v1639_v34 = vsel %vm2797_vm2, %v1635_v46, 0.0 }
 0x444   : > { %v1640_v13 = vsel %vm2816_vm10, %v1636_v15, 0.0  ;;  %v1667_v63 = vrot.slane %v1639_v34, 4 }
 0x445   : > { %v1668_v52 = vrot.slane %v1640_v13, 4 }
 0x446   : > { %v1681_v3 = vsel %vm1680_vm8, %v1678_v36, %v1667_v63 }
 0x447   : > { %v1682_v12 = vsel %vm1680_vm8, %v1679_v5, %v1668_v52  ;;  %v1684_v9 = vsel %vm1683_vm9, %v1681_v3, %v1673_v37 }
 0x448   : > { %v1685_v51 = vsel %vm1683_vm9, %v1682_v12, %v1674_v60  ;;  %v1687_v17 = vsel %vm1686_vm12, %v1684_v9, 0.0 }
 0x449   : > { %v1688_v58 = vsel %vm1686_vm12, %v1685_v51, 0.0 }
 0x44a   : > { %v1689_v28 = vadd.f32 %v1688_v58, %v1687_v17 }
 0x44c   : > { %1690 = vadd.xlane.f32.xlu0 %v1689_v28 }
 0x4d9   : > { %v1691_v33 = vpop.xlane.xlu0 %1690 }
 0x4da   : > { %v1692_v41 = vsel %vm1686_vm12, %v1691_v33, 0.0 }
 0x4db   : > { %1695 = vperm.xlu1 %1818, %v1692_v41  }
 0x55a   : > { %v1696_v11 = vpop.permute.xlu1 %1695 }
 0x55b   : > { %1698 = vst [vmem:[%s343_s12] sm:$0xff] %v1696_v11 }
 0x55c PF: > { %s14_s15 = sadd.s32 1, %s1842_s15  }
 0x55d   : > { %p11_p5 = scmp.ge.s32.totalorder %s14_s15, 4  }
 0x55f   :  { %13 = sbr.rel (!%p11_p5) target bundleno = 1 (0x1), region = 75 }

</bundles_post_ra>
